<compile_context>
chip_gen: v7x
topology: tpu7x:2x2x1
jax: 0.10.0
libtpu: 0.0.40
codegen_flags: <defaults>
</compile_context>

<pallas_src>
import functools

import jax
import jax.numpy as jnp
from jax import lax
from jax.experimental import pallas as pl
from jax.experimental.pallas import tpu as pltpu


# Safe on v7x (64 MiB physical VMEM), plenty of headroom on v5e/v6e (128 MiB).
_VMEM_LIMIT = 48 * 1024 * 1024
_LN_EPS = 1e-5  # PyTorch nn.LayerNorm default


def _pick_tile(dim, target, align):
    """Largest tile <= target that divides `dim` and is a multiple of `align`.

    Falls back to the full dimension (always legal for a BlockSpec)."""
    if dim <= target:
        return dim
    t = (target // align) * align
    while t >= align:
        if dim % t == 0:
            return t
        t -= align
    return dim


# ---------------------- [1] input_fc + positional encoding ------------------

def _input_proj_kernel(x_ref, w_ref, b_ref, pe_ref, o_ref):
    x = x_ref[0]
    w = w_ref[...]
    y = jnp.dot(x.astype(w.dtype), w, preferred_element_type=jnp.float32)
    y = y + b_ref[...].astype(jnp.float32) + pe_ref[...].astype(jnp.float32)
    o_ref[0] = y.astype(o_ref.dtype)


def input_projection(x, w, b, pe):
    """x: (B, S, Din) -> x @ w + b + pe, output (B, S, D)."""
    B, S, Din = x.shape
    D = w.shape[1]
    ts = _pick_tile(S, 512, 8)
    return pl.pallas_call(
        _input_proj_kernel,
        out_shape=jax.ShapeDtypeStruct((B, S, D), jnp.float32),
        grid=(B, S // ts),
        in_specs=[
            pl.BlockSpec((1, ts, Din), lambda bi, si: (bi, si, 0)),
            pl.BlockSpec((Din, D), lambda bi, si: (0, 0)),
            pl.BlockSpec((1, D), lambda bi, si: (0, 0)),
            pl.BlockSpec((ts, D), lambda bi, si: (si, 0)),
        ],
        out_specs=pl.BlockSpec((1, ts, D), lambda bi, si: (bi, si, 0)),
        compiler_params=pltpu.CompilerParams(
            dimension_semantics=("parallel", "parallel"),
            vmem_limit_bytes=_VMEM_LIMIT),
    )(x, w, b.reshape(1, D), pe)


# -------- [2] fused QKV proj + MHA + out proj + residual + LayerNorm --------

def _attn_block_kernel(lens_ref, x_ref, wqkv_ref, bqkv_ref, wo_ref, bo_ref,
                       g_ref, bb_ref, o_ref, *, num_heads, head_dim, eps,
                       mxu_dtype):
    b = pl.program_id(0)
    S = x_ref.shape[1]
    D = x_ref.shape[2]
    length = lens_ref[b]

    x = x_ref[0].astype(jnp.float32)                       # (S, D) residual

    # Fused QKV projection: one (S, D) @ (D, 3D) matmul, stays in VMEM.
    wqkv = wqkv_ref[...]
    qkv = jnp.dot(x.astype(wqkv.dtype), wqkv,
                  preferred_element_type=jnp.float32)
    qkv = qkv + bqkv_ref[...].astype(jnp.float32)          # (S, 3D)

    # Additive key-pad bias from the prefetched length (no (B,S,S) mask in
    # HBM). (1, S) broadcasts over the query axis.
    key_pos = lax.broadcasted_iota(jnp.int32, (1, S), 1)
    bias = jnp.where(key_pos >= length, jnp.float32(-1e9), jnp.float32(0.0))
    scale = jnp.float32(1.0 / float(head_dim) ** 0.5)

    ctx = []
    for h in range(num_heads):  # all heads of this batch element in one step
        q = qkv[:, h * head_dim:(h + 1) * head_dim]
        k = qkv[:, D + h * head_dim:D + (h + 1) * head_dim]
        v = qkv[:, 2 * D + h * head_dim:2 * D + (h + 1) * head_dim]
        # q @ k^T without materializing a transpose.
        s = lax.dot_general(q.astype(mxu_dtype), k.astype(mxu_dtype),
                            (((1,), (1,)), ((), ())),
                            preferred_element_type=jnp.float32)
        s = s * scale + bias
        m = jnp.max(s, axis=-1, keepdims=True)
        p = jnp.exp(s - m)
        denom = jnp.sum(p, axis=-1, keepdims=True)
        p = p * pl.reciprocal(denom, approx=True)
        ctx.append(jnp.dot(p.astype(mxu_dtype), v.astype(mxu_dtype),
                           preferred_element_type=jnp.float32))
    ctx = jnp.concatenate(ctx, axis=-1)                    # (S, D) lane-dense

    # Output projection + residual + post-LayerNorm, all in VMEM.
    wo = wo_ref[...]
    y = jnp.dot(ctx.astype(wo.dtype), wo, preferred_element_type=jnp.float32)
    y = y + bo_ref[...].astype(jnp.float32) + x
    mean = jnp.mean(y, axis=-1, keepdims=True)
    var = jnp.mean(jnp.square(y - mean), axis=-1, keepdims=True)
    yn = (y - mean) * lax.rsqrt(var + eps)
    o_ref[0] = (yn * g_ref[...].astype(jnp.float32)
                + bb_ref[...].astype(jnp.float32)).astype(o_ref.dtype)


def attention_block(x, inputs_lens, wqkv, bqkv, wo, bo, gamma, beta,
                    num_heads, mxu_dtype, eps=_LN_EPS):
    """LayerNorm(MHA(x) @ wo + bo + x); x: (B, S, D), lens: (B,) int32."""
    B, S, D = x.shape
    Dh = D // num_heads
    grid_spec = pltpu.PrefetchScalarGridSpec(
        num_scalar_prefetch=1,
        grid=(B,),
        in_specs=[
            pl.BlockSpec((1, S, D), lambda bi, lens: (bi, 0, 0)),
            pl.BlockSpec((D, 3 * D), lambda bi, lens: (0, 0)),
            pl.BlockSpec((1, 3 * D), lambda bi, lens: (0, 0)),
            pl.BlockSpec((D, D), lambda bi, lens: (0, 0)),
            pl.BlockSpec((1, D), lambda bi, lens: (0, 0)),
            pl.BlockSpec((1, D), lambda bi, lens: (0, 0)),
            pl.BlockSpec((1, D), lambda bi, lens: (0, 0)),
        ],
        out_specs=pl.BlockSpec((1, S, D), lambda bi, lens: (bi, 0, 0)),
    )
    return pl.pallas_call(
        functools.partial(_attn_block_kernel, num_heads=num_heads, head_dim=Dh,
                          eps=eps, mxu_dtype=mxu_dtype),
        out_shape=jax.ShapeDtypeStruct((B, S, D), jnp.float32),
        grid_spec=grid_spec,
        compiler_params=pltpu.CompilerParams(
            dimension_semantics=("parallel",),
            vmem_limit_bytes=_VMEM_LIMIT),
    )(inputs_lens, x, wqkv, bqkv.reshape(1, 3 * D), wo, bo.reshape(1, D),
      gamma.reshape(1, D), beta.reshape(1, D))


# --------------------- [3] FFN + residual + LayerNorm ------------------------

def _ffn_ln_kernel(x_ref, w1_ref, b1_ref, w2_ref, b2_ref, g_ref, bb_ref, o_ref,
                   *, eps):
    x = x_ref[...].astype(jnp.float32)
    w1 = w1_ref[...]
    w2 = w2_ref[...]
    h = jnp.dot(x.astype(w1.dtype), w1, preferred_element_type=jnp.float32)
    h = jnp.maximum(h + b1_ref[...].astype(jnp.float32), 0.0)
    y = jnp.dot(h.astype(w2.dtype), w2, preferred_element_type=jnp.float32)
    y = y + b2_ref[...].astype(jnp.float32) + x
    mean = jnp.mean(y, axis=-1, keepdims=True)
    var = jnp.mean(jnp.square(y - mean), axis=-1, keepdims=True)
    yn = (y - mean) * lax.rsqrt(var + eps)
    o_ref[...] = (yn * g_ref[...].astype(jnp.float32)
                  + bb_ref[...].astype(jnp.float32)).astype(o_ref.dtype)


def ffn_residual_layernorm(x2, w1, b1, w2, b2, gamma, beta, eps=_LN_EPS):
    """LayerNorm(relu(x2 @ w1 + b1) @ w2 + b2 + x2); (rows, FF) stays in VMEM."""
    M, D = x2.shape
    FF = w1.shape[1]
    tm = _pick_tile(M, 256, 8)
    return pl.pallas_call(
        functools.partial(_ffn_ln_kernel, eps=eps),
        out_shape=jax.ShapeDtypeStruct((M, D), jnp.float32),
        grid=(M // tm,),
        in_specs=[
            pl.BlockSpec((tm, D), lambda i: (i, 0)),
            pl.BlockSpec((D, FF), lambda i: (0, 0)),
            pl.BlockSpec((1, FF), lambda i: (0, 0)),
            pl.BlockSpec((FF, D), lambda i: (0, 0)),
            pl.BlockSpec((1, D), lambda i: (0, 0)),
            pl.BlockSpec((1, D), lambda i: (0, 0)),
            pl.BlockSpec((1, D), lambda i: (0, 0)),
        ],
        out_specs=pl.BlockSpec((tm, D), lambda i: (i, 0)),
        compiler_params=pltpu.CompilerParams(
            dimension_semantics=("parallel",),
            vmem_limit_bytes=_VMEM_LIMIT),
    )(x2, w1, b1.reshape(1, FF), w2, b2.reshape(1, D),
      gamma.reshape(1, D), beta.reshape(1, D))


# ------------------------------ model pieces --------------------------------

def positional_encoding(seq_len, d_model, dtype=jnp.float32):
    pos = jnp.arange(seq_len, dtype=jnp.float32)[:, None]
    i = jnp.arange(0, d_model, 2, dtype=jnp.float32)[None, :]
    angle = pos / jnp.power(10000.0, i / float(d_model))
    pe = jnp.zeros((seq_len, d_model), dtype=jnp.float32)
    pe = pe.at[:, 0::2].set(jnp.sin(angle))
    pe = pe.at[:, 1::2].set(jnp.cos(angle))
    return pe.astype(dtype)


def encoder_layer(x, inputs_lens, p, num_heads, mxu_dtype):
    B, S, D = x.shape
    # Self-attention sub-layer (QKV proj + MHA + out proj + residual + LN).
    x = attention_block(x, inputs_lens, p["w_qkv"], p["b_qkv"],
                        p["wo"], p["bo"], p["ln1_g"], p["ln1_b"],
                        num_heads, mxu_dtype)
    # Position-wise FFN sub-layer (FFN + residual + LN) over all B*S rows.
    x2 = ffn_residual_layernorm(x.reshape(B * S, D), p["ff_w1"], p["ff_b1"],
                                p["ff_w2"], p["ff_b2"],
                                p["ln2_g"], p["ln2_b"])
    return x2.reshape(B, S, D)


def audio_encoder_forward(params, inputs, inputs_lens, num_heads,
                          mxu_dtype=jnp.bfloat16):
    """inputs: (B, input_size, seq_len) -> outputs: (B, seq_len, model_dim)."""
    x = jnp.transpose(inputs, (0, 2, 1))                  # (B, S, Din)
    B, S, _ = x.shape
    D = params["input_fc_w"].shape[1]
    assert D % num_heads == 0

    lens = inputs_lens.astype(jnp.int32)
    pe = positional_encoding(S, D)
    # input_fc + positional-encoding add, fused. input_dropout: eval identity.
    x = input_projection(x, params["input_fc_w"], params["input_fc_b"], pe)
    for lp in params["layers"]:
        x = encoder_layer(x, lens, lp, num_heads, mxu_dtype)
    return x


# --------------------------- parameter creation -----------------------------

def init_params(key, input_size, model_dim, ff_dim, num_layers,
                weight_dtype=jnp.bfloat16):
    def dense(k, fan_in, fan_out):
        k1, k2 = jax.random.split(k)
        bound = 1.0 / float(fan_in) ** 0.5
        w = jax.random.uniform(k1, (fan_in, fan_out), jnp.float32, -bound, bound)
        b = jax.random.uniform(k2, (fan_out,), jnp.float32, -bound, bound)
        return w, b

    keys = jax.random.split(key, num_layers + 1)
    fc_w, fc_b = dense(keys[0], input_size, model_dim)
    layers = []
    for li in range(num_layers):
        lk = jax.random.split(keys[li + 1], 6)
        wq, bq = dense(lk[0], model_dim, model_dim)
        wk, bk = dense(lk[1], model_dim, model_dim)
        wv, bv = dense(lk[2], model_dim, model_dim)
        wo, bo = dense(lk[3], model_dim, model_dim)
        w1, b1 = dense(lk[4], model_dim, ff_dim)
        w2, b2 = dense(lk[5], ff_dim, model_dim)
        layers.append({
            # Q|K|V fused on the output (lane) axis.
            "w_qkv": jnp.concatenate([wq, wk, wv], axis=1).astype(weight_dtype),
            "b_qkv": jnp.concatenate([bq, bk, bv], axis=0),
            "wo": wo.astype(weight_dtype), "bo": bo,
            "ff_w1": w1.astype(weight_dtype), "ff_b1": b1,
            "ff_w2": w2.astype(weight_dtype), "ff_b2": b2,
            "ln1_g": jnp.ones((model_dim,), jnp.float32),
            "ln1_b": jnp.zeros((model_dim,), jnp.float32),
            "ln2_g": jnp.ones((model_dim,), jnp.float32),
            "ln2_b": jnp.zeros((model_dim,), jnp.float32),
        })
    return {"input_fc_w": fc_w.astype(weight_dtype), "input_fc_b": fc_b,
            "layers": layers}


# ----------------------------------- main -----------------------------------

if __name__ == "__main__":
    # Small shapes consistent with the module: batch=2, input_size=16, seq=8,
    # model_dim=32, ff_dim=64, num_layers=2, num_heads=4.
    B, Din, S = 2, 16, 8
    D, FF, L, H = 32, 64, 2, 4

    key = jax.random.PRNGKey(0)
    kp, kx = jax.random.split(key)
    params = init_params(kp, Din, D, FF, L)

    inputs = jax.random.normal(kx, (B, Din, S), jnp.float32)   # (batch, dim, seq)
    inputs_lens = jnp.array([S, 5], dtype=jnp.int32)           # (batch,)

    fwd = jax.jit(functools.partial(audio_encoder_forward, num_heads=H))
    out = fwd(params, inputs, inputs_lens)
    out = jax.block_until_ready(out)

    assert out.shape == (B, S, D), out.shape
    assert bool(jnp.all(jnp.isfinite(out)))
    print("KERNEL_OK")
</pallas_src>

<mosaic_0001>
module attributes {stable_mosaic.version = 11 : i64} {
  func.func @_input_proj_kernel(%arg0: i32, %arg1: i32, %arg2: memref<1x8x16xf32, #tpu.memory_space<vmem>>, %arg3: memref<16x32xbf16, #tpu.memory_space<vmem>>, %arg4: memref<1x32xf32, #tpu.memory_space<vmem>>, %arg5: memref<8x32xf32, #tpu.memory_space<vmem>>, %arg6: memref<1x8x32xf32, #tpu.memory_space<vmem>>) attributes {dimension_semantics = [#tpu.dimension_semantics<parallel>, #tpu.dimension_semantics<parallel>], iteration_bounds = array<i64: 2, 1>, scalar_prefetch = 0 : i64, scratch_operands = 0 : i64, tpu.core_type = #tpu.core_type<tc>, window_params = [{transform_indices = @transform_0, window_bounds = array<i64: 1, 8, 16>}, {pipeline_mode = #tpu.pipeline_mode<synchronous>, transform_indices = @transform_1, window_bounds = array<i64: 16, 32>}, {pipeline_mode = #tpu.pipeline_mode<synchronous>, transform_indices = @transform_2, window_bounds = array<i64: 1, 32>}, {transform_indices = @transform_3, window_bounds = array<i64: 8, 32>}, {transform_indices = @transform_4, window_bounds = array<i64: 1, 8, 32>}]} {
    %c0 = arith.constant 0 : index
    %c0_0 = arith.constant 0 : index
    %c0_1 = arith.constant 0 : index
    %0 = vector.load %arg2[%c0, %c0_0, %c0_1] : memref<1x8x16xf32, #tpu.memory_space<vmem>>, vector<1x8x16xf32>
    %1 = vector.shape_cast %0 : vector<1x8x16xf32> to vector<8x16xf32>
    %c0_2 = arith.constant 0 : index
    %c0_3 = arith.constant 0 : index
    %2 = vector.load %arg3[%c0_2, %c0_3] : memref<16x32xbf16, #tpu.memory_space<vmem>>, vector<16x32xbf16>
    %3 = arith.truncf %1 : vector<8x16xf32> to vector<8x16xbf16>
    %cst = arith.constant dense<0.000000e+00> : vector<8x32xf32>
    %4 = tpu.matmul %3, %2, %cst {dimension_numbers = #tpu.dot_dimension_numbers<[1], [0], [0], [1], [0, 0, 1, 1], [], []>} : vector<8x16xbf16>, vector<16x32xbf16>, vector<8x32xf32> -> vector<8x32xf32>
    %c0_4 = arith.constant 0 : index
    %c0_5 = arith.constant 0 : index
    %5 = vector.load %arg4[%c0_4, %c0_5] : memref<1x32xf32, #tpu.memory_space<vmem>>, vector<1x32xf32>
    %6 = vector.broadcast %5 : vector<1x32xf32> to vector<8x32xf32>
    %7 = arith.addf %4, %6 : vector<8x32xf32>
    %c0_6 = arith.constant 0 : index
    %c0_7 = arith.constant 0 : index
    %8 = vector.load %arg5[%c0_6, %c0_7] : memref<8x32xf32, #tpu.memory_space<vmem>>, vector<8x32xf32>
    %9 = arith.addf %7, %8 : vector<8x32xf32>
    %c0_8 = arith.constant 0 : index
    %c0_9 = arith.constant 0 : index
    %c0_10 = arith.constant 0 : index
    %10 = vector.load %arg6[%c0_8, %c0_9, %c0_10] : memref<1x8x32xf32, #tpu.memory_space<vmem>>, vector<1x8x32xf32>
    %11 = vector.shape_cast %10 : vector<1x8x32xf32> to vector<8x32xf32>
    %12 = vector.shape_cast %9 : vector<8x32xf32> to vector<1x8x32xf32>
    tpu.vector_store %arg6[%c0_8, %c0_9, %c0_10], %12 {strides = array<i32>} : memref<1x8x32xf32, #tpu.memory_space<vmem>>, vector<1x8x32xf32>,
    return
  }
  func.func @transform_0(%arg0: i32, %arg1: i32) -> (i32, i32, i32) {
    %c0_i32 = arith.constant 0 : i32
    %c0_i32_0 = arith.constant 0 : i32
    return %arg0, %arg1, %c0_i32 : i32, i32, i32
  }
  func.func @transform_1(%arg0: i32, %arg1: i32) -> (i32, i32) {
    %c0_i32 = arith.constant 0 : i32
    %c0_i32_0 = arith.constant 0 : i32
    %c0_i32_1 = arith.constant 0 : i32
    return %c0_i32, %c0_i32_0 : i32, i32
  }
  func.func @transform_2(%arg0: i32, %arg1: i32) -> (i32, i32) {
    %c0_i32 = arith.constant 0 : i32
    %c0_i32_0 = arith.constant 0 : i32
    %c0_i32_1 = arith.constant 0 : i32
    return %c0_i32, %c0_i32_0 : i32, i32
  }
  func.func @transform_3(%arg0: i32, %arg1: i32) -> (i32, i32) {
    %c0_i32 = arith.constant 0 : i32
    %c0_i32_0 = arith.constant 0 : i32
    return %arg1, %c0_i32 : i32, i32
  }
  func.func @transform_4(%arg0: i32, %arg1: i32) -> (i32, i32, i32) {
    %c0_i32 = arith.constant 0 : i32
    %c0_i32_0 = arith.constant 0 : i32
    return %arg0, %arg1, %c0_i32 : i32, i32, i32
  }
}

module attributes {stable_mosaic.version = 11 : i64} {
  func.func @_attn_block_kernel(%arg0: i32, %arg1: memref<2xi32, #tpu.memory_space<smem>>, %arg2: memref<1x8x32xf32, #tpu.memory_space<vmem>>, %arg3: memref<32x96xbf16, #tpu.memory_space<vmem>>, %arg4: memref<1x96xf32, #tpu.memory_space<vmem>>, %arg5: memref<32x32xbf16, #tpu.memory_space<vmem>>, %arg6: memref<1x32xf32, #tpu.memory_space<vmem>>, %arg7: memref<1x32xf32, #tpu.memory_space<vmem>>, %arg8: memref<1x32xf32, #tpu.memory_space<vmem>>, %arg9: memref<1x8x32xf32, #tpu.memory_space<vmem>>) attributes {dimension_semantics = [#tpu.dimension_semantics<parallel>], iteration_bounds = array<i64: 2>, scalar_prefetch = 1 : i64, scratch_operands = 0 : i64, tpu.core_type = #tpu.core_type<tc>, window_params = [{transform_indices = @transform_0, window_bounds = array<i64: 1, 8, 32>}, {pipeline_mode = #tpu.pipeline_mode<synchronous>, transform_indices = @transform_1, window_bounds = array<i64: 32, 96>}, {pipeline_mode = #tpu.pipeline_mode<synchronous>, transform_indices = @transform_2, window_bounds = array<i64: 1, 96>}, {pipeline_mode = #tpu.pipeline_mode<synchronous>, transform_indices = @transform_3, window_bounds = array<i64: 32, 32>}, {pipeline_mode = #tpu.pipeline_mode<synchronous>, transform_indices = @transform_4, window_bounds = array<i64: 1, 32>}, {pipeline_mode = #tpu.pipeline_mode<synchronous>, transform_indices = @transform_5, window_bounds = array<i64: 1, 32>}, {pipeline_mode = #tpu.pipeline_mode<synchronous>, transform_indices = @transform_6, window_bounds = array<i64: 1, 32>}, {transform_indices = @transform_7, window_bounds = array<i64: 1, 8, 32>}]} {
    %0 = arith.index_cast %arg0 : i32 to index
    %1 = memref.load %arg1[%0] : memref<2xi32, #tpu.memory_space<smem>>
    %c0 = arith.constant 0 : index
    %c0_0 = arith.constant 0 : index
    %c0_1 = arith.constant 0 : index
    %2 = vector.load %arg2[%c0, %c0_0, %c0_1] : memref<1x8x32xf32, #tpu.memory_space<vmem>>, vector<1x8x32xf32>
    %3 = vector.shape_cast %2 : vector<1x8x32xf32> to vector<8x32xf32>
    %c0_2 = arith.constant 0 : index
    %c0_3 = arith.constant 0 : index
    %4 = vector.load %arg3[%c0_2, %c0_3] : memref<32x96xbf16, #tpu.memory_space<vmem>>, vector<32x96xbf16>
    %5 = arith.truncf %3 : vector<8x32xf32> to vector<8x32xbf16>
    %cst = arith.constant dense<0.000000e+00> : vector<8x96xf32>
    %6 = tpu.matmul %5, %4, %cst {dimension_numbers = #tpu.dot_dimension_numbers<[1], [0], [0], [1], [0, 0, 1, 1], [], []>} : vector<8x32xbf16>, vector<32x96xbf16>, vector<8x96xf32> -> vector<8x96xf32>
    %c0_4 = arith.constant 0 : index
    %c0_5 = arith.constant 0 : index
    %7 = vector.load %arg4[%c0_4, %c0_5] : memref<1x96xf32, #tpu.memory_space<vmem>>, vector<1x96xf32>
    %8 = vector.broadcast %7 : vector<1x96xf32> to vector<8x96xf32>
    %9 = arith.addf %6, %8 : vector<8x96xf32>
    %10 = tpu.iota {dimensions = array<i32: 1>} : vector<1x8xi32>
    %11 = vector.broadcast %1 : i32 to vector<1x8xi32>
    %12 = arith.cmpi sge, %10, %11 : vector<1x8xi32>
    %cst_6 = arith.constant -1.000000e+09 : f32
    %cst_7 = arith.constant 0.000000e+00 : f32
    %13 = vector.broadcast %cst_6 : f32 to vector<1x8xf32>
    %14 = vector.broadcast %cst_7 : f32 to vector<1x8xf32>
    %15 = arith.select %12, %13, %14 : vector<1x8xi1>, vector<1x8xf32>
    %16 = vector.extract_strided_slice %9 {offsets = [0, 0], sizes = [8, 8], strides = [1, 1]} : vector<8x96xf32> to vector<8x8xf32>
    %17 = vector.extract_strided_slice %9 {offsets = [0, 32], sizes = [8, 8], strides = [1, 1]} : vector<8x96xf32> to vector<8x8xf32>
    %18 = vector.extract_strided_slice %9 {offsets = [0, 64], sizes = [8, 8], strides = [1, 1]} : vector<8x96xf32> to vector<8x8xf32>
    %19 = arith.truncf %16 : vector<8x8xf32> to vector<8x8xbf16>
    %20 = arith.truncf %17 : vector<8x8xf32> to vector<8x8xbf16>
    %cst_8 = arith.constant dense<0.000000e+00> : vector<8x8xf32>
    %21 = tpu.matmul %19, %20, %cst_8 {dimension_numbers = #tpu.dot_dimension_numbers<[1], [1], [0], [0], [0, 0, 1, 0], [], []>} : vector<8x8xbf16>, vector<8x8xbf16>, vector<8x8xf32> -> vector<8x8xf32>
    %cst_9 = arith.constant 0.353553385 : f32
    %22 = vector.broadcast %cst_9 : f32 to vector<8x8xf32>
    %23 = arith.mulf %21, %22 : vector<8x8xf32>
    %24 = vector.broadcast %15 : vector<1x8xf32> to vector<8x8xf32>
    %25 = arith.addf %23, %24 : vector<8x8xf32>
    %cst_10 = arith.constant dense<0xFF800000> : vector<8xf32>
    %26 = vector.multi_reduction <maximumf>, %25, %cst_10 [1] : vector<8x8xf32> to vector<8xf32>
    %27 = vector.shape_cast %26 : vector<8xf32> to vector<8x1xf32>
    %28 = vector.broadcast %27 : vector<8x1xf32> to vector<8x8xf32>
    %29 = arith.subf %25, %28 : vector<8x8xf32>
    %30 = math.exp %29 : vector<8x8xf32>
    %cst_11 = arith.constant dense<0.000000e+00> : vector<8xf32>
    %31 = vector.multi_reduction <add>, %30, %cst_11 [1] : vector<8x8xf32> to vector<8xf32>
    %32 = vector.shape_cast %31 : vector<8xf32> to vector<8x1xf32>
    %33 = tpu.reciprocal %32 {approx = true} : vector<8x1xf32> -> vector<8x1xf32>
    %34 = vector.broadcast %33 : vector<8x1xf32> to vector<8x8xf32>
    %35 = arith.mulf %30, %34 : vector<8x8xf32>
    %36 = arith.truncf %35 : vector<8x8xf32> to vector<8x8xbf16>
    %37 = arith.truncf %18 : vector<8x8xf32> to vector<8x8xbf16>
    %cst_12 = arith.constant dense<0.000000e+00> : vector<8x8xf32>
    %38 = tpu.matmul %36, %37, %cst_12 {dimension_numbers = #tpu.dot_dimension_numbers<[1], [0], [0], [1], [0, 0, 1, 1], [], []>} : vector<8x8xbf16>, vector<8x8xbf16>, vector<8x8xf32> -> vector<8x8xf32>
    %39 = vector.extract_strided_slice %9 {offsets = [0, 8], sizes = [8, 8], strides = [1, 1]} : vector<8x96xf32> to vector<8x8xf32>
    %40 = vector.extract_strided_slice %9 {offsets = [0, 40], sizes = [8, 8], strides = [1, 1]} : vector<8x96xf32> to vector<8x8xf32>
    %41 = vector.extract_strided_slice %9 {offsets = [0, 72], sizes = [8, 8], strides = [1, 1]} : vector<8x96xf32> to vector<8x8xf32>
    %42 = arith.truncf %39 : vector<8x8xf32> to vector<8x8xbf16>
    %43 = arith.truncf %40 : vector<8x8xf32> to vector<8x8xbf16>
    %cst_13 = arith.constant dense<0.000000e+00> : vector<8x8xf32>
    %44 = tpu.matmul %42, %43, %cst_13 {dimension_numbers = #tpu.dot_dimension_numbers<[1], [1], [0], [0], [0, 0, 1, 0], [], []>} : vector<8x8xbf16>, vector<8x8xbf16>, vector<8x8xf32> -> vector<8x8xf32>
    %cst_14 = arith.constant 0.353553385 : f32
    %45 = vector.broadcast %cst_14 : f32 to vector<8x8xf32>
    %46 = arith.mulf %44, %45 : vector<8x8xf32>
    %47 = vector.broadcast %15 : vector<1x8xf32> to vector<8x8xf32>
    %48 = arith.addf %46, %47 : vector<8x8xf32>
    %cst_15 = arith.constant dense<0xFF800000> : vector<8xf32>
    %49 = vector.multi_reduction <maximumf>, %48, %cst_15 [1] : vector<8x8xf32> to vector<8xf32>
    %50 = vector.shape_cast %49 : vector<8xf32> to vector<8x1xf32>
    %51 = vector.broadcast %50 : vector<8x1xf32> to vector<8x8xf32>
    %52 = arith.subf %48, %51 : vector<8x8xf32>
    %53 = math.exp %52 : vector<8x8xf32>
    %cst_16 = arith.constant dense<0.000000e+00> : vector<8xf32>
    %54 = vector.multi_reduction <add>, %53, %cst_16 [1] : vector<8x8xf32> to vector<8xf32>
    %55 = vector.shape_cast %54 : vector<8xf32> to vector<8x1xf32>
    %56 = tpu.reciprocal %55 {approx = true} : vector<8x1xf32> -> vector<8x1xf32>
    %57 = vector.broadcast %56 : vector<8x1xf32> to vector<8x8xf32>
    %58 = arith.mulf %53, %57 : vector<8x8xf32>
    %59 = arith.truncf %58 : vector<8x8xf32> to vector<8x8xbf16>
    %60 = arith.truncf %41 : vector<8x8xf32> to vector<8x8xbf16>
    %cst_17 = arith.constant dense<0.000000e+00> : vector<8x8xf32>
    %61 = tpu.matmul %59, %60, %cst_17 {dimension_numbers = #tpu.dot_dimension_numbers<[1], [0], [0], [1], [0, 0, 1, 1], [], []>} : vector<8x8xbf16>, vector<8x8xbf16>, vector<8x8xf32> -> vector<8x8xf32>
    %62 = vector.extract_strided_slice %9 {offsets = [0, 16], sizes = [8, 8], strides = [1, 1]} : vector<8x96xf32> to vector<8x8xf32>
    %63 = vector.extract_strided_slice %9 {offsets = [0, 48], sizes = [8, 8], strides = [1, 1]} : vector<8x96xf32> to vector<8x8xf32>
    %64 = vector.extract_strided_slice %9 {offsets = [0, 80], sizes = [8, 8], strides = [1, 1]} : vector<8x96xf32> to vector<8x8xf32>
    %65 = arith.truncf %62 : vector<8x8xf32> to vector<8x8xbf16>
    %66 = arith.truncf %63 : vector<8x8xf32> to vector<8x8xbf16>
    %cst_18 = arith.constant dense<0.000000e+00> : vector<8x8xf32>
    %67 = tpu.matmul %65, %66, %cst_18 {dimension_numbers = #tpu.dot_dimension_numbers<[1], [1], [0], [0], [0, 0, 1, 0], [], []>} : vector<8x8xbf16>, vector<8x8xbf16>, vector<8x8xf32> -> vector<8x8xf32>
    %cst_19 = arith.constant 0.353553385 : f32
    %68 = vector.broadcast %cst_19 : f32 to vector<8x8xf32>
    %69 = arith.mulf %67, %68 : vector<8x8xf32>
    %70 = vector.broadcast %15 : vector<1x8xf32> to vector<8x8xf32>
    %71 = arith.addf %69, %70 : vector<8x8xf32>
    %cst_20 = arith.constant dense<0xFF800000> : vector<8xf32>
    %72 = vector.multi_reduction <maximumf>, %71, %cst_20 [1] : vector<8x8xf32> to vector<8xf32>
    %73 = vector.shape_cast %72 : vector<8xf32> to vector<8x1xf32>
    %74 = vector.broadcast %73 : vector<8x1xf32> to vector<8x8xf32>
    %75 = arith.subf %71, %74 : vector<8x8xf32>
    %76 = math.exp %75 : vector<8x8xf32>
    %cst_21 = arith.constant dense<0.000000e+00> : vector<8xf32>
    %77 = vector.multi_reduction <add>, %76, %cst_21 [1] : vector<8x8xf32> to vector<8xf32>
    %78 = vector.shape_cast %77 : vector<8xf32> to vector<8x1xf32>
    %79 = tpu.reciprocal %78 {approx = true} : vector<8x1xf32> -> vector<8x1xf32>
    %80 = vector.broadcast %79 : vector<8x1xf32> to vector<8x8xf32>
    %81 = arith.mulf %76, %80 : vector<8x8xf32>
    %82 = arith.truncf %81 : vector<8x8xf32> to vector<8x8xbf16>
    %83 = arith.truncf %64 : vector<8x8xf32> to vector<8x8xbf16>
    %cst_22 = arith.constant dense<0.000000e+00> : vector<8x8xf32>
    %84 = tpu.matmul %82, %83, %cst_22 {dimension_numbers = #tpu.dot_dimension_numbers<[1], [0], [0], [1], [0, 0, 1, 1], [], []>} : vector<8x8xbf16>, vector<8x8xbf16>, vector<8x8xf32> -> vector<8x8xf32>
    %85 = vector.extract_strided_slice %9 {offsets = [0, 24], sizes = [8, 8], strides = [1, 1]} : vector<8x96xf32> to vector<8x8xf32>
    %86 = vector.extract_strided_slice %9 {offsets = [0, 56], sizes = [8, 8], strides = [1, 1]} : vector<8x96xf32> to vector<8x8xf32>
    %87 = vector.extract_strided_slice %9 {offsets = [0, 88], sizes = [8, 8], strides = [1, 1]} : vector<8x96xf32> to vector<8x8xf32>
    %88 = arith.truncf %85 : vector<8x8xf32> to vector<8x8xbf16>
    %89 = arith.truncf %86 : vector<8x8xf32> to vector<8x8xbf16>
    %cst_23 = arith.constant dense<0.000000e+00> : vector<8x8xf32>
    %90 = tpu.matmul %88, %89, %cst_23 {dimension_numbers = #tpu.dot_dimension_numbers<[1], [1], [0], [0], [0, 0, 1, 0], [], []>} : vector<8x8xbf16>, vector<8x8xbf16>, vector<8x8xf32> -> vector<8x8xf32>
    %cst_24 = arith.constant 0.353553385 : f32
    %91 = vector.broadcast %cst_24 : f32 to vector<8x8xf32>
    %92 = arith.mulf %90, %91 : vector<8x8xf32>
    %93 = vector.broadcast %15 : vector<1x8xf32> to vector<8x8xf32>
    %94 = arith.addf %92, %93 : vector<8x8xf32>
    %cst_25 = arith.constant dense<0xFF800000> : vector<8xf32>
    %95 = vector.multi_reduction <maximumf>, %94, %cst_25 [1] : vector<8x8xf32> to vector<8xf32>
    %96 = vector.shape_cast %95 : vector<8xf32> to vector<8x1xf32>
    %97 = vector.broadcast %96 : vector<8x1xf32> to vector<8x8xf32>
    %98 = arith.subf %94, %97 : vector<8x8xf32>
    %99 = math.exp %98 : vector<8x8xf32>
    %cst_26 = arith.constant dense<0.000000e+00> : vector<8xf32>
    %100 = vector.multi_reduction <add>, %99, %cst_26 [1] : vector<8x8xf32> to vector<8xf32>
    %101 = vector.shape_cast %100 : vector<8xf32> to vector<8x1xf32>
    %102 = tpu.reciprocal %101 {approx = true} : vector<8x1xf32> -> vector<8x1xf32>
    %103 = vector.broadcast %102 : vector<8x1xf32> to vector<8x8xf32>
    %104 = arith.mulf %99, %103 : vector<8x8xf32>
    %105 = arith.truncf %104 : vector<8x8xf32> to vector<8x8xbf16>
    %106 = arith.truncf %87 : vector<8x8xf32> to vector<8x8xbf16>
    %cst_27 = arith.constant dense<0.000000e+00> : vector<8x8xf32>
    %107 = tpu.matmul %105, %106, %cst_27 {dimension_numbers = #tpu.dot_dimension_numbers<[1], [0], [0], [1], [0, 0, 1, 1], [], []>} : vector<8x8xbf16>, vector<8x8xbf16>, vector<8x8xf32> -> vector<8x8xf32>
    %108 = tpu.concatenate %38, %61, %84, %107 in 1 : vector<8x8xf32>, vector<8x8xf32>, vector<8x8xf32>, vector<8x8xf32> -> vector<8x32xf32>
    %c0_28 = arith.constant 0 : index
    %c0_29 = arith.constant 0 : index
    %109 = vector.load %arg5[%c0_28, %c0_29] : memref<32x32xbf16, #tpu.memory_space<vmem>>, vector<32x32xbf16>
    %110 = arith.truncf %108 : vector<8x32xf32> to vector<8x32xbf16>
    %cst_30 = arith.constant dense<0.000000e+00> : vector<8x32xf32>
    %111 = tpu.matmul %110, %109, %cst_30 {dimension_numbers = #tpu.dot_dimension_numbers<[1], [0], [0], [1], [0, 0, 1, 1], [], []>} : vector<8x32xbf16>, vector<32x32xbf16>, vector<8x32xf32> -> vector<8x32xf32>
    %c0_31 = arith.constant 0 : index
    %c0_32 = arith.constant 0 : index
    %112 = vector.load %arg6[%c0_31, %c0_32] : memref<1x32xf32, #tpu.memory_space<vmem>>, vector<1x32xf32>
    %113 = vector.broadcast %112 : vector<1x32xf32> to vector<8x32xf32>
    %114 = arith.addf %111, %113 : vector<8x32xf32>
    %115 = arith.addf %114, %3 : vector<8x32xf32>
    %cst_33 = arith.constant dense<0.000000e+00> : vector<8xf32>
    %116 = vector.multi_reduction <add>, %115, %cst_33 [1] : vector<8x32xf32> to vector<8xf32>
    %117 = vector.shape_cast %116 : vector<8xf32> to vector<8x1xf32>
    %cst_34 = arith.constant 3.200000e+01 : f32
    %118 = vector.broadcast %cst_34 : f32 to vector<8x1xf32>
    %119 = arith.divf %117, %118 : vector<8x1xf32>
    %120 = vector.broadcast %119 : vector<8x1xf32> to vector<8x32xf32>
    %121 = arith.subf %115, %120 : vector<8x32xf32>
    %122 = arith.mulf %121, %121 : vector<8x32xf32>
    %cst_35 = arith.constant dense<0.000000e+00> : vector<8xf32>
    %123 = vector.multi_reduction <add>, %122, %cst_35 [1] : vector<8x32xf32> to vector<8xf32>
    %124 = vector.shape_cast %123 : vector<8xf32> to vector<8x1xf32>
    %cst_36 = arith.constant 3.200000e+01 : f32
    %125 = vector.broadcast %cst_36 : f32 to vector<8x1xf32>
    %126 = arith.divf %124, %125 : vector<8x1xf32>
    %127 = vector.broadcast %119 : vector<8x1xf32> to vector<8x32xf32>
    %128 = arith.subf %115, %127 : vector<8x32xf32>
    %cst_37 = arith.constant 9.99999974E-6 : f32
    %129 = vector.broadcast %cst_37 : f32 to vector<8x1xf32>
    %130 = arith.addf %126, %129 : vector<8x1xf32>
    %131 = math.rsqrt %130 : vector<8x1xf32>
    %132 = vector.broadcast %131 : vector<8x1xf32> to vector<8x32xf32>
    %133 = arith.mulf %128, %132 : vector<8x32xf32>
    %c0_38 = arith.constant 0 : index
    %c0_39 = arith.constant 0 : index
    %134 = vector.load %arg7[%c0_38, %c0_39] : memref<1x32xf32, #tpu.memory_space<vmem>>, vector<1x32xf32>
    %135 = vector.broadcast %134 : vector<1x32xf32> to vector<8x32xf32>
    %136 = arith.mulf %133, %135 : vector<8x32xf32>
    %c0_40 = arith.constant 0 : index
    %c0_41 = arith.constant 0 : index
    %137 = vector.load %arg8[%c0_40, %c0_41] : memref<1x32xf32, #tpu.memory_space<vmem>>, vector<1x32xf32>
    %138 = vector.broadcast %137 : vector<1x32xf32> to vector<8x32xf32>
    %139 = arith.addf %136, %138 : vector<8x32xf32>
    %c0_42 = arith.constant 0 : index
    %c0_43 = arith.constant 0 : index
    %c0_44 = arith.constant 0 : index
    %140 = vector.load %arg9[%c0_42, %c0_43, %c0_44] : memref<1x8x32xf32, #tpu.memory_space<vmem>>, vector<1x8x32xf32>
    %141 = vector.shape_cast %140 : vector<1x8x32xf32> to vector<8x32xf32>
    %142 = vector.shape_cast %139 : vector<8x32xf32> to vector<1x8x32xf32>
    tpu.vector_store %arg9[%c0_42, %c0_43, %c0_44], %142 {strides = array<i32>} : memref<1x8x32xf32, #tpu.memory_space<vmem>>, vector<1x8x32xf32>,
    return
  }
  func.func @transform_0(%arg0: i32, %arg1: memref<2xi32, #tpu.memory_space<smem>>) -> (i32, i32, i32) {
    %c0_i32 = arith.constant 0 : i32
    %c0_i32_0 = arith.constant 0 : i32
    %c0_i32_1 = arith.constant 0 : i32
    return %arg0, %c0_i32, %c0_i32_0 : i32, i32, i32
  }
  func.func @transform_1(%arg0: i32, %arg1: memref<2xi32, #tpu.memory_space<smem>>) -> (i32, i32) {
    %c0_i32 = arith.constant 0 : i32
    %c0_i32_0 = arith.constant 0 : i32
    %c0_i32_1 = arith.constant 0 : i32
    return %c0_i32, %c0_i32_0 : i32, i32
  }
  func.func @transform_2(%arg0: i32, %arg1: memref<2xi32, #tpu.memory_space<smem>>) -> (i32, i32) {
    %c0_i32 = arith.constant 0 : i32
    %c0_i32_0 = arith.constant 0 : i32
    %c0_i32_1 = arith.constant 0 : i32
    return %c0_i32, %c0_i32_0 : i32, i32
  }
  func.func @transform_3(%arg0: i32, %arg1: memref<2xi32, #tpu.memory_space<smem>>) -> (i32, i32) {
    %c0_i32 = arith.constant 0 : i32
    %c0_i32_0 = arith.constant 0 : i32
    %c0_i32_1 = arith.constant 0 : i32
    return %c0_i32, %c0_i32_0 : i32, i32
  }
  func.func @transform_4(%arg0: i32, %arg1: memref<2xi32, #tpu.memory_space<smem>>) -> (i32, i32) {
    %c0_i32 = arith.constant 0 : i32
    %c0_i32_0 = arith.constant 0 : i32
    %c0_i32_1 = arith.constant 0 : i32
    return %c0_i32, %c0_i32_0 : i32, i32
  }
  func.func @transform_5(%arg0: i32, %arg1: memref<2xi32, #tpu.memory_space<smem>>) -> (i32, i32) {
    %c0_i32 = arith.constant 0 : i32
    %c0_i32_0 = arith.constant 0 : i32
    %c0_i32_1 = arith.constant 0 : i32
    return %c0_i32, %c0_i32_0 : i32, i32
  }
  func.func @transform_6(%arg0: i32, %arg1: memref<2xi32, #tpu.memory_space<smem>>) -> (i32, i32) {
    %c0_i32 = arith.constant 0 : i32
    %c0_i32_0 = arith.constant 0 : i32
    %c0_i32_1 = arith.constant 0 : i32
    return %c0_i32, %c0_i32_0 : i32, i32
  }
  func.func @transform_7(%arg0: i32, %arg1: memref<2xi32, #tpu.memory_space<smem>>) -> (i32, i32, i32) {
    %c0_i32 = arith.constant 0 : i32
    %c0_i32_0 = arith.constant 0 : i32
    %c0_i32_1 = arith.constant 0 : i32
    return %arg0, %c0_i32, %c0_i32_0 : i32, i32, i32
  }
}

module attributes {stable_mosaic.version = 11 : i64} {
  func.func @_ffn_ln_kernel(%arg0: i32, %arg1: memref<16x32xf32, #tpu.memory_space<vmem>>, %arg2: memref<32x64xbf16, #tpu.memory_space<vmem>>, %arg3: memref<1x64xf32, #tpu.memory_space<vmem>>, %arg4: memref<64x32xbf16, #tpu.memory_space<vmem>>, %arg5: memref<1x32xf32, #tpu.memory_space<vmem>>, %arg6: memref<1x32xf32, #tpu.memory_space<vmem>>, %arg7: memref<1x32xf32, #tpu.memory_space<vmem>>, %arg8: memref<16x32xf32, #tpu.memory_space<vmem>>) attributes {dimension_semantics = [#tpu.dimension_semantics<parallel>], iteration_bounds = array<i64: 1>, scalar_prefetch = 0 : i64, scratch_operands = 0 : i64, tpu.core_type = #tpu.core_type<tc>, window_params = [{transform_indices = @transform_0, window_bounds = array<i64: 16, 32>}, {pipeline_mode = #tpu.pipeline_mode<synchronous>, transform_indices = @transform_1, window_bounds = array<i64: 32, 64>}, {pipeline_mode = #tpu.pipeline_mode<synchronous>, transform_indices = @transform_2, window_bounds = array<i64: 1, 64>}, {pipeline_mode = #tpu.pipeline_mode<synchronous>, transform_indices = @transform_3, window_bounds = array<i64: 64, 32>}, {pipeline_mode = #tpu.pipeline_mode<synchronous>, transform_indices = @transform_4, window_bounds = array<i64: 1, 32>}, {pipeline_mode = #tpu.pipeline_mode<synchronous>, transform_indices = @transform_5, window_bounds = array<i64: 1, 32>}, {pipeline_mode = #tpu.pipeline_mode<synchronous>, transform_indices = @transform_6, window_bounds = array<i64: 1, 32>}, {transform_indices = @transform_7, window_bounds = array<i64: 16, 32>}]} {
    %c0 = arith.constant 0 : index
    %c0_0 = arith.constant 0 : index
    %0 = vector.load %arg1[%c0, %c0_0] : memref<16x32xf32, #tpu.memory_space<vmem>>, vector<16x32xf32>
    %c0_1 = arith.constant 0 : index
    %c0_2 = arith.constant 0 : index
    %1 = vector.load %arg2[%c0_1, %c0_2] : memref<32x64xbf16, #tpu.memory_space<vmem>>, vector<32x64xbf16>
    %c0_3 = arith.constant 0 : index
    %c0_4 = arith.constant 0 : index
    %2 = vector.load %arg4[%c0_3, %c0_4] : memref<64x32xbf16, #tpu.memory_space<vmem>>, vector<64x32xbf16>
    %3 = arith.truncf %0 : vector<16x32xf32> to vector<16x32xbf16>
    %cst = arith.constant dense<0.000000e+00> : vector<16x64xf32>
    %4 = tpu.matmul %3, %1, %cst {dimension_numbers = #tpu.dot_dimension_numbers<[1], [0], [0], [1], [0, 0, 1, 1], [], []>} : vector<16x32xbf16>, vector<32x64xbf16>, vector<16x64xf32> -> vector<16x64xf32>
    %c0_5 = arith.constant 0 : index
    %c0_6 = arith.constant 0 : index
    %5 = vector.load %arg3[%c0_5, %c0_6] : memref<1x64xf32, #tpu.memory_space<vmem>>, vector<1x64xf32>
    %6 = vector.broadcast %5 : vector<1x64xf32> to vector<16x64xf32>
    %7 = arith.addf %4, %6 : vector<16x64xf32>
    %cst_7 = arith.constant 0.000000e+00 : f32
    %8 = vector.broadcast %cst_7 : f32 to vector<16x64xf32>
    %9 = arith.maximumf %7, %8 : vector<16x64xf32>
    %10 = arith.truncf %9 : vector<16x64xf32> to vector<16x64xbf16>
    %cst_8 = arith.constant dense<0.000000e+00> : vector<16x32xf32>
    %11 = tpu.matmul %10, %2, %cst_8 {dimension_numbers = #tpu.dot_dimension_numbers<[1], [0], [0], [1], [0, 0, 1, 1], [], []>} : vector<16x64xbf16>, vector<64x32xbf16>, vector<16x32xf32> -> vector<16x32xf32>
    %c0_9 = arith.constant 0 : index
    %c0_10 = arith.constant 0 : index
    %12 = vector.load %arg5[%c0_9, %c0_10] : memref<1x32xf32, #tpu.memory_space<vmem>>, vector<1x32xf32>
    %13 = vector.broadcast %12 : vector<1x32xf32> to vector<16x32xf32>
    %14 = arith.addf %11, %13 : vector<16x32xf32>
    %15 = arith.addf %14, %0 : vector<16x32xf32>
    %cst_11 = arith.constant dense<0.000000e+00> : vector<16xf32>
    %16 = vector.multi_reduction <add>, %15, %cst_11 [1] : vector<16x32xf32> to vector<16xf32>
    %17 = vector.shape_cast %16 : vector<16xf32> to vector<16x1xf32>
    %cst_12 = arith.constant 3.200000e+01 : f32
    %18 = vector.broadcast %cst_12 : f32 to vector<16x1xf32>
    %19 = arith.divf %17, %18 : vector<16x1xf32>
    %20 = vector.broadcast %19 : vector<16x1xf32> to vector<16x32xf32>
    %21 = arith.subf %15, %20 : vector<16x32xf32>
    %22 = arith.mulf %21, %21 : vector<16x32xf32>
    %cst_13 = arith.constant dense<0.000000e+00> : vector<16xf32>
    %23 = vector.multi_reduction <add>, %22, %cst_13 [1] : vector<16x32xf32> to vector<16xf32>
    %24 = vector.shape_cast %23 : vector<16xf32> to vector<16x1xf32>
    %cst_14 = arith.constant 3.200000e+01 : f32
    %25 = vector.broadcast %cst_14 : f32 to vector<16x1xf32>
    %26 = arith.divf %24, %25 : vector<16x1xf32>
    %27 = vector.broadcast %19 : vector<16x1xf32> to vector<16x32xf32>
    %28 = arith.subf %15, %27 : vector<16x32xf32>
    %cst_15 = arith.constant 9.99999974E-6 : f32
    %29 = vector.broadcast %cst_15 : f32 to vector<16x1xf32>
    %30 = arith.addf %26, %29 : vector<16x1xf32>
    %31 = math.rsqrt %30 : vector<16x1xf32>
    %32 = vector.broadcast %31 : vector<16x1xf32> to vector<16x32xf32>
    %33 = arith.mulf %28, %32 : vector<16x32xf32>
    %c0_16 = arith.constant 0 : index
    %c0_17 = arith.constant 0 : index
    %34 = vector.load %arg6[%c0_16, %c0_17] : memref<1x32xf32, #tpu.memory_space<vmem>>, vector<1x32xf32>
    %35 = vector.broadcast %34 : vector<1x32xf32> to vector<16x32xf32>
    %36 = arith.mulf %33, %35 : vector<16x32xf32>
    %c0_18 = arith.constant 0 : index
    %c0_19 = arith.constant 0 : index
    %37 = vector.load %arg7[%c0_18, %c0_19] : memref<1x32xf32, #tpu.memory_space<vmem>>, vector<1x32xf32>
    %38 = vector.broadcast %37 : vector<1x32xf32> to vector<16x32xf32>
    %39 = arith.addf %36, %38 : vector<16x32xf32>
    %c0_20 = arith.constant 0 : index
    %c0_21 = arith.constant 0 : index
    %40 = vector.load %arg8[%c0_20, %c0_21] : memref<16x32xf32, #tpu.memory_space<vmem>>, vector<16x32xf32>
    tpu.vector_store %arg8[%c0_20, %c0_21], %39 {strides = array<i32>} : memref<16x32xf32, #tpu.memory_space<vmem>>, vector<16x32xf32>,
    return
  }
  func.func @transform_0(%arg0: i32) -> (i32, i32) {
    %c0_i32 = arith.constant 0 : i32
    %c0_i32_0 = arith.constant 0 : i32
    return %arg0, %c0_i32 : i32, i32
  }
  func.func @transform_1(%arg0: i32) -> (i32, i32) {
    %c0_i32 = arith.constant 0 : i32
    %c0_i32_0 = arith.constant 0 : i32
    %c0_i32_1 = arith.constant 0 : i32
    return %c0_i32, %c0_i32_0 : i32, i32
  }
  func.func @transform_2(%arg0: i32) -> (i32, i32) {
    %c0_i32 = arith.constant 0 : i32
    %c0_i32_0 = arith.constant 0 : i32
    %c0_i32_1 = arith.constant 0 : i32
    return %c0_i32, %c0_i32_0 : i32, i32
  }
  func.func @transform_3(%arg0: i32) -> (i32, i32) {
    %c0_i32 = arith.constant 0 : i32
    %c0_i32_0 = arith.constant 0 : i32
    %c0_i32_1 = arith.constant 0 : i32
    return %c0_i32, %c0_i32_0 : i32, i32
  }
  func.func @transform_4(%arg0: i32) -> (i32, i32) {
    %c0_i32 = arith.constant 0 : i32
    %c0_i32_0 = arith.constant 0 : i32
    %c0_i32_1 = arith.constant 0 : i32
    return %c0_i32, %c0_i32_0 : i32, i32
  }
  func.func @transform_5(%arg0: i32) -> (i32, i32) {
    %c0_i32 = arith.constant 0 : i32
    %c0_i32_0 = arith.constant 0 : i32
    %c0_i32_1 = arith.constant 0 : i32
    return %c0_i32, %c0_i32_0 : i32, i32
  }
  func.func @transform_6(%arg0: i32) -> (i32, i32) {
    %c0_i32 = arith.constant 0 : i32
    %c0_i32_0 = arith.constant 0 : i32
    %c0_i32_1 = arith.constant 0 : i32
    return %c0_i32, %c0_i32_0 : i32, i32
  }
  func.func @transform_7(%arg0: i32) -> (i32, i32) {
    %c0_i32 = arith.constant 0 : i32
    %c0_i32_0 = arith.constant 0 : i32
    return %arg0, %c0_i32 : i32, i32
  }
}

module attributes {stable_mosaic.version = 11 : i64} {
  func.func @_ffn_ln_kernel(%arg0: i32, %arg1: memref<16x32xf32, #tpu.memory_space<vmem>>, %arg2: memref<32x64xbf16, #tpu.memory_space<vmem>>, %arg3: memref<1x64xf32, #tpu.memory_space<vmem>>, %arg4: memref<64x32xbf16, #tpu.memory_space<vmem>>, %arg5: memref<1x32xf32, #tpu.memory_space<vmem>>, %arg6: memref<1x32xf32, #tpu.memory_space<vmem>>, %arg7: memref<1x32xf32, #tpu.memory_space<vmem>>, %arg8: memref<16x32xf32, #tpu.memory_space<vmem>>) attributes {dimension_semantics = [#tpu.dimension_semantics<parallel>], iteration_bounds = array<i64: 1>, scalar_prefetch = 0 : i64, scratch_operands = 0 : i64, tpu.core_type = #tpu.core_type<tc>, window_params = [{transform_indices = @transform_0, window_bounds = array<i64: 16, 32>}, {pipeline_mode = #tpu.pipeline_mode<synchronous>, transform_indices = @transform_1, window_bounds = array<i64: 32, 64>}, {pipeline_mode = #tpu.pipeline_mode<synchronous>, transform_indices = @transform_2, window_bounds = array<i64: 1, 64>}, {pipeline_mode = #tpu.pipeline_mode<synchronous>, transform_indices = @transform_3, window_bounds = array<i64: 64, 32>}, {pipeline_mode = #tpu.pipeline_mode<synchronous>, transform_indices = @transform_4, window_bounds = array<i64: 1, 32>}, {pipeline_mode = #tpu.pipeline_mode<synchronous>, transform_indices = @transform_5, window_bounds = array<i64: 1, 32>}, {pipeline_mode = #tpu.pipeline_mode<synchronous>, transform_indices = @transform_6, window_bounds = array<i64: 1, 32>}, {transform_indices = @transform_7, window_bounds = array<i64: 16, 32>}]} {
    %c0 = arith.constant 0 : index
    %c0_0 = arith.constant 0 : index
    %0 = vector.load %arg1[%c0, %c0_0] : memref<16x32xf32, #tpu.memory_space<vmem>>, vector<16x32xf32>
    %c0_1 = arith.constant 0 : index
    %c0_2 = arith.constant 0 : index
    %1 = vector.load %arg2[%c0_1, %c0_2] : memref<32x64xbf16, #tpu.memory_space<vmem>>, vector<32x64xbf16>
    %c0_3 = arith.constant 0 : index
    %c0_4 = arith.constant 0 : index
    %2 = vector.load %arg4[%c0_3, %c0_4] : memref<64x32xbf16, #tpu.memory_space<vmem>>, vector<64x32xbf16>
    %3 = arith.truncf %0 : vector<16x32xf32> to vector<16x32xbf16>
    %cst = arith.constant dense<0.000000e+00> : vector<16x64xf32>
    %4 = tpu.matmul %3, %1, %cst {dimension_numbers = #tpu.dot_dimension_numbers<[1], [0], [0], [1], [0, 0, 1, 1], [], []>} : vector<16x32xbf16>, vector<32x64xbf16>, vector<16x64xf32> -> vector<16x64xf32>
    %c0_5 = arith.constant 0 : index
    %c0_6 = arith.constant 0 : index
    %5 = vector.load %arg3[%c0_5, %c0_6] : memref<1x64xf32, #tpu.memory_space<vmem>>, vector<1x64xf32>
    %6 = vector.broadcast %5 : vector<1x64xf32> to vector<16x64xf32>
    %7 = arith.addf %4, %6 : vector<16x64xf32>
    %cst_7 = arith.constant 0.000000e+00 : f32
    %8 = vector.broadcast %cst_7 : f32 to vector<16x64xf32>
    %9 = arith.maximumf %7, %8 : vector<16x64xf32>
    %10 = arith.truncf %9 : vector<16x64xf32> to vector<16x64xbf16>
    %cst_8 = arith.constant dense<0.000000e+00> : vector<16x32xf32>
    %11 = tpu.matmul %10, %2, %cst_8 {dimension_numbers = #tpu.dot_dimension_numbers<[1], [0], [0], [1], [0, 0, 1, 1], [], []>} : vector<16x64xbf16>, vector<64x32xbf16>, vector<16x32xf32> -> vector<16x32xf32>
    %c0_9 = arith.constant 0 : index
    %c0_10 = arith.constant 0 : index
    %12 = vector.load %arg5[%c0_9, %c0_10] : memref<1x32xf32, #tpu.memory_space<vmem>>, vector<1x32xf32>
    %13 = vector.broadcast %12 : vector<1x32xf32> to vector<16x32xf32>
    %14 = arith.addf %11, %13 : vector<16x32xf32>
    %15 = arith.addf %14, %0 : vector<16x32xf32>
    %cst_11 = arith.constant dense<0.000000e+00> : vector<16xf32>
    %16 = vector.multi_reduction <add>, %15, %cst_11 [1] : vector<16x32xf32> to vector<16xf32>
    %17 = vector.shape_cast %16 : vector<16xf32> to vector<16x1xf32>
    %cst_12 = arith.constant 3.200000e+01 : f32
    %18 = vector.broadcast %cst_12 : f32 to vector<16x1xf32>
    %19 = arith.divf %17, %18 : vector<16x1xf32>
    %20 = vector.broadcast %19 : vector<16x1xf32> to vector<16x32xf32>
    %21 = arith.subf %15, %20 : vector<16x32xf32>
    %22 = arith.mulf %21, %21 : vector<16x32xf32>
    %cst_13 = arith.constant dense<0.000000e+00> : vector<16xf32>
    %23 = vector.multi_reduction <add>, %22, %cst_13 [1] : vector<16x32xf32> to vector<16xf32>
    %24 = vector.shape_cast %23 : vector<16xf32> to vector<16x1xf32>
    %cst_14 = arith.constant 3.200000e+01 : f32
    %25 = vector.broadcast %cst_14 : f32 to vector<16x1xf32>
    %26 = arith.divf %24, %25 : vector<16x1xf32>
    %27 = vector.broadcast %19 : vector<16x1xf32> to vector<16x32xf32>
    %28 = arith.subf %15, %27 : vector<16x32xf32>
    %cst_15 = arith.constant 9.99999974E-6 : f32
    %29 = vector.broadcast %cst_15 : f32 to vector<16x1xf32>
    %30 = arith.addf %26, %29 : vector<16x1xf32>
    %31 = math.rsqrt %30 : vector<16x1xf32>
    %32 = vector.broadcast %31 : vector<16x1xf32> to vector<16x32xf32>
    %33 = arith.mulf %28, %32 : vector<16x32xf32>
    %c0_16 = arith.constant 0 : index
    %c0_17 = arith.constant 0 : index
    %34 = vector.load %arg6[%c0_16, %c0_17] : memref<1x32xf32, #tpu.memory_space<vmem>>, vector<1x32xf32>
    %35 = vector.broadcast %34 : vector<1x32xf32> to vector<16x32xf32>
    %36 = arith.mulf %33, %35 : vector<16x32xf32>
    %c0_18 = arith.constant 0 : index
    %c0_19 = arith.constant 0 : index
    %37 = vector.load %arg7[%c0_18, %c0_19] : memref<1x32xf32, #tpu.memory_space<vmem>>, vector<1x32xf32>
    %38 = vector.broadcast %37 : vector<1x32xf32> to vector<16x32xf32>
    %39 = arith.addf %36, %38 : vector<16x32xf32>
    %c0_20 = arith.constant 0 : index
    %c0_21 = arith.constant 0 : index
    %40 = vector.load %arg8[%c0_20, %c0_21] : memref<16x32xf32, #tpu.memory_space<vmem>>, vector<16x32xf32>
    tpu.vector_store %arg8[%c0_20, %c0_21], %39 {strides = array<i32>} : memref<16x32xf32, #tpu.memory_space<vmem>>, vector<16x32xf32>,
    return
  }
  func.func @transform_0(%arg0: i32) -> (i32, i32) {
    %c0_i32 = arith.constant 0 : i32
    %c0_i32_0 = arith.constant 0 : i32
    return %arg0, %c0_i32 : i32, i32
  }
  func.func @transform_1(%arg0: i32) -> (i32, i32) {
    %c0_i32 = arith.constant 0 : i32
    %c0_i32_0 = arith.constant 0 : i32
    %c0_i32_1 = arith.constant 0 : i32
    return %c0_i32, %c0_i32_0 : i32, i32
  }
  func.func @transform_2(%arg0: i32) -> (i32, i32) {
    %c0_i32 = arith.constant 0 : i32
    %c0_i32_0 = arith.constant 0 : i32
    %c0_i32_1 = arith.constant 0 : i32
    return %c0_i32, %c0_i32_0 : i32, i32
  }
  func.func @transform_3(%arg0: i32) -> (i32, i32) {
    %c0_i32 = arith.constant 0 : i32
    %c0_i32_0 = arith.constant 0 : i32
    %c0_i32_1 = arith.constant 0 : i32
    return %c0_i32, %c0_i32_0 : i32, i32
  }
  func.func @transform_4(%arg0: i32) -> (i32, i32) {
    %c0_i32 = arith.constant 0 : i32
    %c0_i32_0 = arith.constant 0 : i32
    %c0_i32_1 = arith.constant 0 : i32
    return %c0_i32, %c0_i32_0 : i32, i32
  }
  func.func @transform_5(%arg0: i32) -> (i32, i32) {
    %c0_i32 = arith.constant 0 : i32
    %c0_i32_0 = arith.constant 0 : i32
    %c0_i32_1 = arith.constant 0 : i32
    return %c0_i32, %c0_i32_0 : i32, i32
  }
  func.func @transform_6(%arg0: i32) -> (i32, i32) {
    %c0_i32 = arith.constant 0 : i32
    %c0_i32_0 = arith.constant 0 : i32
    %c0_i32_1 = arith.constant 0 : i32
    return %c0_i32, %c0_i32_0 : i32, i32
  }
  func.func @transform_7(%arg0: i32) -> (i32, i32) {
    %c0_i32 = arith.constant 0 : i32
    %c0_i32_0 = arith.constant 0 : i32
    return %arg0, %c0_i32 : i32, i32
  }
}

</mosaic_0001>

<bundles_post_ra>
// kernel: audio_encoder_forward.5
= control target key start
LH: loop header
LB: loop body
LE: loop exit
PB: predicated region body
PF: predicated region fallthrough
CT: control target
= control target key end

     0   :  { %s496_s15 = smov 0   ;;  %s498_s16 = smov 0   ;;  %s538_s0 = inlined_call_operand.vmem [shape: f32[2,8,16], index: 0, kind: input, shape index: {}]   ;;  %s539_s1 = inlined_call_operand.vmem [shape: bf16[16,32], index: 1, kind: input, shape index: {}]   ;;  %s540_s2 = inlined_call_operand.vmem [shape: f32[1,32], index: 2, kind: input, shape index: {}]   ;;  %s541_s3 = inlined_call_operand.vmem [shape: f32[8,32], index: 3, kind: input, shape index: {}]   ;;  %s542_s4 = inlined_call_operand.vmem [shape: f32[2,8,32], index: 4, kind: output, shape index: {}]  }
   0x1   :  { %s500_s17 = smov 0  }
   0x2 LB: > { %s26_s18 = sadd.s32 1, %s463_s16  ;;  %p402_p0 = scmp.ge.s32.totalorder %s467_s17, 1  ;;  %s467_s17 = sphi %s500_s17, %s14_s17   ;;  %s463_s16 = sphi %s498_s16, %s544_s16   ;;  %s459_s15 = sphi %s496_s15, %s543_s15  }
   0x3   : > { %p28_p1 = scmp.ge.s32.totalorder %s26_s18, 2  ;;  %p189_p2 = scmp.lt.s32.totalorder %s467_s17, 3 }
   0x5   : > { %s546_s18 = smov (%p28_p1, %s26_s18), 0  ;;  %p190_p3 = pnand %p402_p0, %p189_p2 }
   0x6   : > { %v444_v0 = vld [vmem:[%s539_s1] sm:$0xff] (!%p190_p3)   ;;  %v469_v1 = vmov (!%p190_p3), 0.0   ;;  %p223_p4 = scmp.lt.s32.totalorder (!%p190_p3), %s459_s15, 1  ;;  %vm470_vm0 = vmmov (!%p190_p3), 0   ;;  %vm259_vm1 = vcmask (!%p190_p3), 130048   ;;  %vm305_vm2 = vcmask (!%p190_p3), 261120  }
   0x7   : > { %193 = sbr.rel (%p190_p3) target bundleno = 237 (0xed), region = 36  ;;  %412 = vmatprep.subr.bf16.mxu0 (!%p190_p3), %v469_v1  ;;  %414 = vmatprep.mubr.msk.bf16.mxu0 (!%p190_p3), %vm470_vm0, %v469_v1  ;;  %v405_v4 = vld [vmem:[%s540_s2] ss:$0 sm:$0xff] (!%p190_p3) }
   0x8   : > { %413 = vmatpush3.bf16.msra.mxu0 (!%p190_p3), %v444_v0  ;;  %v303_v6 = vld [vmem:[%s541_s3] sm:$0xff] (!%p190_p3) }
   0xe   : > { %s548_s15 = smov (!%p223_p4, %s459_s15), 1 }
   0xf   : > { %s403_s21 = sshll.u32 %s548_s15, 3 }
  0x10   : > { %s229_s24 = scalar_lea.vmem %s538_s0, %s403_s21  ;;  %s240_s5 = scalar_lea.vmem %s542_s4, %s403_s21 }
  0x11   : > { %v242_v2 = vld [vmem:[%s229_s24] sm:$0xff] }
  0x12   : > { %v245_v3 = vpack.c.bf16 %v242_v2, %v242_v2 }
  0x14   : > { %415 = vmatmul.mubr.msk.bf16.vlgmr.msra.gmra.mrb[0].mxu0 %vm259_vm1, %v245_v3 }
  0xe7   : > { %v297_v5 = vpop.f32.mrb[0].mxu0 }
  0xe8   : > { %v298_v7 = vadd.f32 %v405_v4, %v297_v5  ;;  %v416_v8 = vpop.f32.mrb[1].mxu0 }
  0xe9   : > { %v300_v9 = vpop.f32.mrb[2].mxu0 }
  0xea   : > { %v304_v10 = vadd.f32 %v303_v6, %v298_v7  ;;  %v417_v11 = vpop.f32.mrb[3].mxu0 }
  0xec   : > { %306 = vst.msk [vmem:[%s240_s5] sm:$0xff] %vm305_vm2, %v304_v10 }
  0xed PF: > { %s14_s17 = sadd.s32 1, %s467_s17   ;;  %s543_s15 = smov %s463_s16 }
  0xee   : > { %p11_p5 = scmp.ge.s32.totalorder %s14_s17, 4   ;;  %s544_s16 = smov %s546_s18 }
  0xf0   :  { %13 = sbr.rel (!%p11_p5) target bundleno = 2 (0x2), region = 69 }

// kernel: audio_encoder_forward.6
= control target key start
LH: loop header
LB: loop body
LE: loop exit
PB: predicated region body
PF: predicated region fallthrough
CT: control target
= control target key end

     0   :  { %s1358_s0 = inlined_call_operand.vmem [shape: s32[2], index: 0, kind: input, shape index: {}]   ;;  %s1359_s1 = inlined_call_operand.vmem [shape: f32[2,8,32], index: 1, kind: input, shape index: {}]   ;;  %s1360_s2 = inlined_call_operand.vmem [shape: bf16[32,96], index: 2, kind: input, shape index: {}]   ;;  %s1361_s3 = inlined_call_operand.vmem [shape: f32[1,96], index: 3, kind: input, shape index: {}]   ;;  %s1362_s4 = inlined_call_operand.vmem [shape: bf16[32,32], index: 4, kind: input, shape index: {}]   ;;  %s1363_s5 = inlined_call_operand.vmem [shape: f32[1,32], index: 5, kind: input, shape index: {}]   ;;  %s1364_s6 = inlined_call_operand.vmem [shape: f32[1,32], index: 6, kind: input, shape index: {}]   ;;  %s1365_s7 = inlined_call_operand.vmem [shape: f32[1,32], index: 7, kind: input, shape index: {}]   ;;  %s1366_s8 = inlined_call_operand.vmem [shape: f32[2,8,32], index: 8, kind: output, shape index: {}]  }
   0x1   :  { %s13_s29 = sshll.u32 %s1358_s0, 4  ;;  %s14_s29 = int_to_ptr.vmem [resolvable:$true] %s13_s29 }
   0x2   :  { %s1136_s30 = scalar_lea.vmem %s14_s29, 16  ;;  %p1141_p1 = scmp.lt.s32.totalorder %s14_s29, %s14_s29 }
   0x3   :  { %p1137_p0 = scmp.ne.s32.totalorder %s14_s29, %s1136_s30  ;;  %p1142_p2 = scmp.lt.s32.totalorder %s1136_s30, %s1136_s30 }
   0x5   :  { %p1143_p3 = por %p1142_p2, %p1141_p1 }
   0x7   :  { %p1144_p4 = pnand %p1143_p3, %p1137_p0 }
   0x9   :  { %1147 = shalt.err (!%p1144_p4)  }
   0xa   :  { %s1158_s9 = smov [#allocation3]  }
   0xb   :  { %16 = dma.vmem_to_smem %s14_s29, 16, %s1158_s9, [#allocation2] }
   0xc   :  { %1152 = dma.done.wait [#allocation2], 16 }
   0xd   :  { %1153 = vsyncadd [#allocation2], 4294967280 }
   0xe   :  { %18 = sfence }
   0xf   :  { %s1223_s10 = smov 0  }
  0x10 LB: > { %s1229_s0 = sadd.s32 4294967295, %s1156_s10   ;;  %p980_p5 = scmp.ge.s32.totalorder %s1156_s10, 1  ;;  %s1156_s10 = sphi %s1223_s10, %s24_s10  }
  0x11   : > { %p243_p6 = scmp.lt.s32.totalorder %s1156_s10, 3 }
  0x13   : > { %p244_p7 = pnand %p980_p5, %p243_p6 }
  0x14   : > { %v1114_v0 = vld [vmem:[%s1360_s2] sm:$0xff] (!%p244_p7)   ;;  %v1159_v1 = vmov (!%p244_p7), 0.0   ;;  %v1115_v2 = vld [vmem:[%s1360_s2 + $0x8] sm:$0xff] (!%p244_p7)   ;;  %vm1160_vm0 = vmmov (!%p244_p7), 0   ;;  %p273_p8 = scmp.lt.s32.totalorder (!%p244_p7), %s1229_s0, 1  ;;  %vm308_vm1 = vcmask (!%p244_p7), 261120   ;;  %v352_v23 = vlaneseq (!%p244_p7) }
  0x15   : > { %247 = sbr.rel (%p244_p7) target bundleno = 1828 (0x724), region = 48  ;;  %1025 = vmatprep.subr.bf16.mxu0 (!%p244_p7), %v1159_v1  ;;  %1033 = vmatprep.subr.bf16.mxu1 (!%p244_p7), %v1159_v1  ;;  %v983_v5 = vld [vmem:[%s1361_s3] ss:$0 sm:$0xff] (!%p244_p7)  ;;  %s1161_s22 = smov (!%p244_p7), 120   ;;  %vm361_vm2 = vcmask (!%p244_p7), 64512   ;;  %vm427_vm4 = vcmask (!%p244_p7), 1043456  }
  0x16   : > { %1026 = vmatpush3.bf16.msra.mxu0 (!%p244_p7), %v1114_v0  ;;  %1029 = vmatprep.mubr.msk.bf16.mxu0 (!%p244_p7), %vm1160_vm0, %v1159_v1  ;;  %s1162_s23 = smov (!%p244_p7), 96   ;;  %s1163_s24 = smov (!%p244_p7), 80   ;;  %v353_v24 = vand.u32 (!%p244_p7), 127, %v352_v23  ;;  %vm820_vm5 = vcmask (!%p244_p7), 130048   ;;  %vm822_vm6 = vcmask (!%p244_p7), 195584  }
  0x17   : > { %1027 = vmatprep.subr.bf16.mxu0 (!%p244_p7), %v1159_v1  ;;  %1035 = vmatprep.mubr.msk.bf16.mxu1 (!%p244_p7), %vm1160_vm0, %v1159_v1  ;;  %s1164_s25 = smov (!%p244_p7), 88   ;;  %s1165_s26 = smov (!%p244_p7), 72  }
  0x18   : > { %s1166_s27 = smov (!%p244_p7), 112   ;;  %s1167_s28 = smov (!%p244_p7), 104  }
  0x19   : > { %s282_s29 = sld [smem:[#allocation3 + %s1229_s0]] (!%p244_p7)  ;;  %s1168_s30 = smov (!%p244_p7), 56  }
  0x1a   : > { %1028 = vmatpush3.bf16.msra.mxu0 (!%p244_p7), %v1115_v2  ;;  %s1169_s9 = smov (!%p244_p7), 64   ;;  %s1171_s11 = smov (!%p244_p7), 48  }
  0x1b   : > { %1039 = vmatprep.subr.bf16.mxu0 (!%p244_p7), %v1159_v1  ;;  %s1172_s12 = smov (!%p244_p7), 8   ;;  %s1174_s20 = smov (!%p244_p7), 24  }
  0x1c   : > { %s1248_s15 = scalar_select %p273_p8, %s1229_s0, 1 }
  0x1d   : > { %s1170_s0 = smov 40  }
  0x1e   : > { %s981_s16 = sshll.u32 %s1248_s15, 3 }
  0x1f   : > { %s276_s19 = scalar_lea.vmem %s1359_s1, %s981_s16  ;;  %v354_v25 = vstv %s282_s29  ;;  %s280_s29 = scalar_lea.vmem %s1366_s8, %s981_s16 }
  0x20   : > { %v1257_v3 = vld [vmem:[%s276_s19] sm:$0xff]  ;;  %vm355_vm3 = vcmp.ge.s32.totalorder %v353_v24, %v354_v25  ;;  %s1173_s19 = smov 16  }
  0x21   : > { %v288_v4 = vpack.c.bf16 %v1257_v3, %v1257_v3  ;;  %v356_v27 = vsel %vm355_vm3, -1e+09, %v1159_v1 }
  0x23   : > { %1030 = vmatmul.mubr.msk.bf16.vlgmr.msra.gmra.mrb[0].mxu0 %vm308_vm1, %v288_v4 }
  0x24   : > { %1041 = vmatprep.mubr.msk.bf16.mxu0 %vm1160_vm0, %v1159_v1 }
  0xf6   : > { %v346_v6 = vpop.f32.mrb[0].mxu0 }
  0xf7   : > { %v347_v7 = vadd.f32 %v983_v5, %v346_v6  ;;  %v1031_v8 = vpop.f32.mrb[1].mxu0 }
  0xf8   : > { %v349_v9 = vpop.f32.mrb[2].mxu0 }
  0xf9   : > { %v1267_v10 = vpack.c.bf16 %v347_v7, %v347_v7  ;;  %v1032_v11 = vpop.f32.mrb[3].mxu0 }
  0xfb   : > { %471 = vrot.lane.b32.xlu1 %v1267_v10, %s1161_s22  ;;  %359 = vrot.lane.b32.xlu0 %v1267_v10, %s1162_s23 }
  0xff   : > { %585 = vrot.lane.b32.xlu1 %v1267_v10, %s1163_s24  ;;  %473 = vrot.lane.b32.xlu0 %v1267_v10, %s1164_s25 }
 0x103   : > { %697 = vrot.lane.b32.xlu1 %v1267_v10, %s1165_s26  ;;  %583 = vrot.lane.b32.xlu0 %v1267_v10, %s1166_s27 }
 0x107   : > { %695 = vrot.lane.b32.xlu0 %v1267_v10, %s1167_s28 }
 0x16d   : > { %v360_v12 = vpop.permute.xlu0 %359  ;;  %v472_v15 = vpop.permute.xlu1 %471 }
 0x16e   : > { %v366_v13 = vsel %vm361_vm2, %v360_v12, 0 }
 0x16f   : > { %1034 = vmatpush3.bf16.xpose.msra.mxu1 %v366_v13 }
 0x170   : > { %1045 = vmatprep.subr.bf16.mxu1 %v1159_v1 }
 0x171   : > { %v474_v14 = vpop.permute.xlu0 %473  ;;  %v586_v17 = vpop.permute.xlu1 %585 }
 0x172   : > { %v479_v16 = vsel %vm361_vm2, %v474_v14, 0  ;;  %v591_v18 = vsel %vm361_vm2, %v586_v17, 0 }
 0x175   : > { %v698_v19 = vpop.permute.xlu1 %697  ;;  %v584_v20 = vpop.permute.xlu0 %583 }
 0x176   : > { %1036 = vmatmul.mubr.msk.bf16.vlgmr.msra.gmra.mrb[0].mxu1 %vm361_vm2, %v1267_v10  ;;  %v703_v21 = vsel %vm361_vm2, %v698_v19, 0 }
 0x177   : > { %1046 = vmatpush3.bf16.xpose.msra.mxu1 %v479_v16  ;;  %1047 = vmatprep.mubr.msk.bf16.mxu1 %vm1160_vm0, %v1159_v1 }
 0x178   : > { %1057 = vmatprep.subr.bf16.mxu1 %v1159_v1 }
 0x179   : > { %v696_v22 = vpop.permute.xlu0 %695 }
 0x17e   : > { %1048 = vmatmul.mubr.msk.bf16.vlgmr.msra.gmra.mrb[4].mxu1 %vm361_vm2, %v472_v15 }
 0x17f   : > { %1058 = vmatpush3.bf16.xpose.msra.mxu1 %v591_v18  ;;  %1059 = vmatprep.mubr.msk.bf16.mxu1 %vm1160_vm0, %v1159_v1 }
 0x180   : > { %1069 = vmatprep.subr.bf16.mxu1 %v1159_v1 }
 0x186   : > { %1060 = vmatmul.mubr.msk.bf16.vlgmr.msra.gmra.mrb[8].mxu1 %vm361_vm2, %v584_v20 }
 0x187   : > { %1070 = vmatpush3.bf16.xpose.msra.mxu1 %v703_v21  ;;  %1071 = vmatprep.mubr.msk.bf16.mxu1 %vm1160_vm0, %v1159_v1 }
 0x188   : > { %1081 = vmatprep.subr.bf16.mxu1 %v1159_v1 }
 0x18e   : > { %1072 = vmatmul.mubr.msk.bf16.vlgmr.msra.gmra.mrb[12].mxu1 %vm361_vm2, %v696_v22 }
 0x18f   : > { %1085 = vmatprep.mubr.msk.bf16.mxu1 %vm1160_vm0, %v1159_v1 }
 0x249   : > { %v402_v26 = vpop.f32.mrb[0].mxu1 }
 0x24a   : > { %v408_v28 = vmul.f32 0.35355338, %v402_v26  ;;  %v1037_v29 = vpop.f32.mrb[1].mxu1 }
 0x24b   : > { %v405_v30 = vpop.f32.mrb[2].mxu1 }
 0x24c   : > { %v1038_v31 = vpop.f32.mrb[3].mxu1  ;;  %v409_v32 = vadd.f32 %v408_v28, %v356_v27 }
 0x24e   : > { %v410_v33 = vsel %vm361_vm2, %v409_v32, -inf }
 0x24f   : > { %411 = vmax.xlane.f32.xlu1 %v410_v33 }
 0x251   : > { %v515_v34 = vpop.f32.mrb[4].mxu1 }
 0x252   : > { %v521_v35 = vmul.f32 0.35355338, %v515_v34  ;;  %v1049_v36 = vpop.f32.mrb[5].mxu1 }
 0x253   : > { %v518_v37 = vpop.f32.mrb[6].mxu1 }
 0x254   : > { %v1050_v38 = vpop.f32.mrb[7].mxu1  ;;  %v522_v39 = vadd.f32 %v521_v35, %v356_v27 }
 0x256   : > { %v523_v40 = vsel %vm361_vm2, %v522_v39, -inf }
 0x257   : > { %524 = vmax.xlane.f32.xlu0 %v523_v40 }
 0x259   : > { %v627_v41 = vpop.f32.mrb[8].mxu1 }
 0x25a   : > { %v633_v42 = vmul.f32 0.35355338, %v627_v41  ;;  %v1061_v43 = vpop.f32.mrb[9].mxu1 }
 0x25b   : > { %v630_v44 = vpop.f32.mrb[10].mxu1 }
 0x25c   : > { %v1062_v45 = vpop.f32.mrb[11].mxu1  ;;  %v634_v46 = vadd.f32 %v633_v42, %v356_v27 }
 0x25d   : > { %v1116_v45 = vld [vmem:[%s1362_s4] sm:$0xff]  }
 0x25e   : > { %v635_v47 = vsel %vm361_vm2, %v634_v46, -inf  ;;  %1082 = vmatpush3.bf16.msra.mxu1 %v1116_v45 }
 0x25f   : > { %636 = vmax.xlane.f32.xlu0 %v635_v47  ;;  %1083 = vmatprep.subr.bf16.mxu1 %v1159_v1 }
 0x261   : > { %v739_v48 = vpop.f32.mrb[12].mxu1 }
 0x262   : > { %v745_v49 = vmul.f32 0.35355338, %v739_v48  ;;  %v1073_v50 = vpop.f32.mrb[13].mxu1 }
 0x263   : > { %v742_v51 = vpop.f32.mrb[14].mxu1 }
 0x264   : > { %v1074_v52 = vpop.f32.mrb[15].mxu1  ;;  %v746_v53 = vadd.f32 %v745_v49, %v356_v27 }
 0x266   : > { %v747_v54 = vsel %vm361_vm2, %v746_v53, -inf }
 0x267   : > { %748 = vmax.xlane.f32.xlu1 %v747_v54 }
 0x2dc   : > { %v412_v55 = vpop.xlane.xlu1 %411 }
 0x2dd   : > { %v413_v56 = vsub.f32 %v409_v32, %v412_v55 }
 0x2df   : > { %v414_v57 = vmul.f32 1.442695, %v413_v56 }
 0x2e1   : > { %1118 = vpow2.f32 %v414_v57 }
 0x2e4   : > { %v525_v58 = vpop.xlane.xlu0 %524 }
 0x2e5   : > { %v526_v59 = vsub.f32 %v522_v39, %v525_v58 }
 0x2e7   : > { %v527_v60 = vmul.f32 1.442695, %v526_v59 }
 0x2e9   : > { %1120 = vpow2.f32 %v527_v60 }
 0x2eb   : > { %v1119_v61 = vpop.eup %1118 }
 0x2ec   : > { %v637_v62 = vpop.xlane.xlu0 %636  ;;  %v416_v63 = vsel %vm361_vm2, %v1119_v61, 0.0 }
 0x2ed   : > { %v638_v0 = vsub.f32 %v634_v46, %v637_v62  ;;  %417 = vadd.xlane.f32.xlu0 %v416_v63  ;;  %v1117_v46 = vld [vmem:[%s1362_s4 + $0x8] sm:$0xff]  }
 0x2ee   : > { %1084 = vmatpush3.bf16.msra.mxu1 %v1117_v46 }
 0x2ef   : > { %v639_v2 = vmul.f32 1.442695, %v638_v0 }
 0x2f1   : > { %1122 = vpow2.f32 %v639_v2 }
 0x2f3   : > { %v1121_v4 = vpop.eup %1120 }
 0x2f4   : > { %v529_v5 = vsel %vm361_vm2, %v1121_v4, 0.0  ;;  %v749_v8 = vpop.xlane.xlu1 %748 }
 0x2f5   : > { %530 = vadd.xlane.f32.xlu1 %v529_v5  ;;  %v750_v9 = vsub.f32 %v746_v53, %v749_v8 }
 0x2f7   : > { %v751_v11 = vmul.f32 1.442695, %v750_v9 }
 0x2f9   : > { %1124 = vpow2.f32 %v751_v11 }
 0x2fb   : > { %v1123_v6 = vpop.eup %1122 }
 0x2fc   : > { %v641_v7 = vsel %vm361_vm2, %v1123_v6, 0.0 }
 0x2fd   : > { %642 = vadd.xlane.f32.xlu0 %v641_v7 }
 0x303   : > { %v1125_v12 = vpop.eup %1124 }
 0x304   : > { %v753_v13 = vsel %vm361_vm2, %v1125_v12, 0.0 }
 0x306   : > { %535 = vrot.lane.b32.xlu1 %v1267_v10, %s1168_s30 }
 0x313   : > { %422 = vrot.lane.b32.xlu0 %v1267_v10, %s1169_s9 }
 0x317   : > { %759 = vrot.lane.b32.xlu0 %v1267_v10, %s1170_s0 }
 0x32a   : > { %754 = vadd.xlane.f32.xlu1 %v753_v13 }
 0x33b   : > { %647 = vrot.lane.b32.xlu1 %v1267_v10, %s1171_s11 }
 0x37a   : > { %v418_v14 = vpop.xlane.xlu0 %417 }
 0x37b   : > { %1126 = vrcp.f32 %v418_v14 }
 0x382   : > { %v531_v15 = vpop.xlane.xlu1 %530 }
 0x383   : > { %1128 = vrcp.f32 %v531_v15 }
 0x385   : > { %v1127_v16 = vpop.eup %1126 }
 0x386   : > { %v420_v18 = vmul.f32 %v1127_v16, %v1119_v61  ;;  %v536_v21 = vpop.permute.xlu1 %535  ;;  %v995_v61 = vld [vmem:[%s1363_s5] ss:$0 sm:$0xff] }
 0x387   : > { %v541_v24 = vsel %vm427_vm4, %v536_v21, 0 }
 0x388   : > { %v421_v22 = vpack.c.bf16 %v420_v18, %v420_v18  ;;  %v1000_v18 = vld [vmem:[%s1365_s7] ss:$0 sm:$0xff] }
 0x38a   : > { %v643_v17 = vpop.xlane.xlu0 %642 }
 0x38b   : > { %1130 = vrcp.f32 %v643_v17 }
 0x38d   : > { %v1129_v23 = vpop.eup %1128 }
 0x38e   : > { %v423_v19 = vpop.permute.xlu0 %422  ;;  %v533_v10 = vmul.f32 %v1129_v23, %v1121_v4 }
 0x38f   : > { %v429_v20 = vsel %vm427_vm4, %v423_v19, 0 }
 0x390   : > { %1040 = vmatpush3.bf16.msra.mxu0 %v429_v20  ;;  %v534_v25 = vpack.c.bf16 %v533_v10, %v533_v10 }
 0x391   : > { %1051 = vmatprep.subr.bf16.mxu0 %v1159_v1 }
 0x392   : > { %v760_v31 = vpop.permute.xlu0 %759 }
 0x393   : > { %1042 = vmatmul.mubr.msk.bf16.vlgmr.msra.gmra.mrb[4].mxu0 %vm361_vm2, %v421_v22  ;;  %v765_v33 = vsel %vm427_vm4, %v760_v31, 0 }
 0x394   : > { %1052 = vmatpush3.bf16.msra.mxu0 %v541_v24  ;;  %1053 = vmatprep.mubr.msk.bf16.mxu0 %vm1160_vm0, %v1159_v1 }
 0x395   : > { %1063 = vmatprep.subr.bf16.mxu0 %v1159_v1  ;;  %v1131_v26 = vpop.eup %1130 }
 0x396   : > { %v645_v28 = vmul.f32 %v1131_v26, %v1123_v6 }
 0x398   : > { %v646_v32 = vpack.c.bf16 %v645_v28, %v645_v28 }
 0x39b   : > { %1054 = vmatmul.mubr.msk.bf16.vlgmr.msra.gmra.mrb[8].mxu0 %vm361_vm2, %v534_v25 }
 0x39c   : > { %1065 = vmatprep.mubr.msk.bf16.mxu0 %vm1160_vm0, %v1159_v1 }
 0x3b7   : > { %v755_v27 = vpop.xlane.xlu1 %754 }
 0x3b8   : > { %1132 = vrcp.f32 %v755_v27 }
 0x3bb   : > { %v648_v29 = vpop.permute.xlu1 %647 }
 0x3bc   : > { %v653_v30 = vsel %vm427_vm4, %v648_v29, 0 }
 0x3bd   : > { %1064 = vmatpush3.bf16.msra.mxu0 %v653_v30 }
 0x3be   : > { %1075 = vmatprep.subr.bf16.mxu0 %v1159_v1 }
 0x3c0   : > { %1066 = vmatmul.mubr.msk.bf16.vlgmr.msra.gmra.mrb[12].mxu0 %vm361_vm2, %v646_v32 }
 0x3c1   : > { %1076 = vmatpush3.bf16.msra.mxu0 %v765_v33  ;;  %1077 = vmatprep.mubr.msk.bf16.mxu0 %vm1160_vm0, %v1159_v1 }
 0x3c2   : > { %v1133_v34 = vpop.eup %1132 }
 0x3c3   : > { %v757_v35 = vmul.f32 %v1133_v34, %v1125_v12 }
 0x3c5   : > { %v758_v36 = vpack.c.bf16 %v757_v35, %v757_v35 }
 0x3c8   : > { %1078 = vmatmul.mubr.msk.bf16.vlgmr.msra.gmra.mrb[16].mxu0 %vm361_vm2, %v758_v36 }
 0x466   : > { %v465_v37 = vpop.f32.mrb[4].mxu0 }
 0x467   : > { %v1043_v38 = vpop.f32.mrb[5].mxu0 }
 0x468   : > { %v468_v39 = vpop.f32.mrb[6].mxu0 }
 0x469   : > { %v1044_v40 = vpop.f32.mrb[7].mxu0 }
 0x46e   : > { %v577_v41 = vpop.f32.mrb[8].mxu0 }
 0x46f   : > { %808 = vrot.lane.b32.xlu1 %v577_v41, %s1172_s12  ;;  %v1055_v42 = vpop.f32.mrb[9].mxu0 }
 0x470   : > { %v580_v43 = vpop.f32.mrb[10].mxu0 }
 0x471   : > { %v1056_v44 = vpop.f32.mrb[11].mxu0 }
 0x493   : > { %v689_v47 = vpop.f32.mrb[12].mxu0 }
 0x494   : > { %812 = vrot.lane.b32.xlu0 %v689_v47, %s1173_s19  ;;  %v1067_v48 = vpop.f32.mrb[13].mxu0 }
 0x495   : > { %v692_v49 = vpop.f32.mrb[14].mxu0 }
 0x496   : > { %v1068_v50 = vpop.f32.mrb[15].mxu0 }
 0x49b   : > { %v801_v51 = vpop.f32.mrb[16].mxu0 }
 0x49c   : > { %816 = vrot.lane.b32.xlu1 %v801_v51, %s1174_s20  ;;  %v1079_v52 = vpop.f32.mrb[17].mxu0 }
 0x49d   : > { %v804_v53 = vpop.f32.mrb[18].mxu0 }
 0x49e   : > { %v1080_v54 = vpop.f32.mrb[19].mxu0 }
 0x4e1   : > { %v809_v55 = vpop.permute.xlu1 %808 }
 0x4e2   : > { %v819_v56 = vsel %vm361_vm2, %v465_v37, %v809_v55 }
 0x506   : > { %v813_v1 = vpop.permute.xlu0 %812 }
 0x507   : > { %v821_v57 = vsel %vm820_vm5, %v819_v56, %v813_v1 }
 0x50e   : > { %v817_v58 = vpop.permute.xlu1 %816 }
 0x50f   : > { %v823_v59 = vsel %vm822_vm6, %v821_v57, %v817_v58 }
 0x510   : > { %v828_v60 = vpack.c.bf16 %v823_v59, %v823_v59 }
 0x512   : > { %1086 = vmatmul.mubr.msk.bf16.vlgmr.msra.gmra.mrb[16].mxu1 %vm308_vm1, %v828_v60 }
 0x5e5   : > { %v885_v62 = vpop.f32.mrb[16].mxu1 }
 0x5e6   : > { %v886_v63 = vadd.f32 %v995_v61, %v885_v62  ;;  %v1087_v0 = vpop.f32.mrb[17].mxu1 }
 0x5e7   : > { %v888_v2 = vpop.f32.mrb[18].mxu1 }
 0x5e8   : > { %v1088_v4 = vpop.f32.mrb[19].mxu1  ;;  %v891_v5 = vadd.f32 %v886_v63, %v1257_v3  ;;  %v999_v3 = vld [vmem:[%s1364_s6] ss:$0 sm:$0xff] }
 0x5ea   : > { %v892_v6 = vsel %vm308_vm1, %v891_v5, 0.0 }
 0x5eb   : > { %893 = vadd.xlane.f32.xlu0 %v892_v6 }
 0x678   : > { %v894_v7 = vpop.xlane.xlu0 %893 }
 0x679   : > { %v896_v8 = vmul.f32 0.03125, %v894_v7 }
 0x67b   : > { %v897_v9 = vsub.f32 %v891_v5, %v896_v8 }
 0x67d   : > { %v898_v11 = vmul.f32 %v897_v9, %v897_v9 }
 0x67f   : > { %v899_v12 = vsel %vm308_vm1, %v898_v11, 0.0 }
 0x680   : > { %900 = vadd.xlane.f32.xlu1 %v899_v12 }
 0x70d   : > { %v901_v13 = vpop.xlane.xlu1 %900 }
 0x70e   : > { %v902_v14 = vmul.f32 0.03125, %v901_v13 }
 0x710   : > { %v903_v15 = vadd.f32 1e-05, %v902_v14 }
 0x712   : > { %1134 = vrsqrt.f32 %v903_v15 }
 0x71c   : > { %v1135_v16 = vpop.eup %1134 }
 0x71d   : > { %v905_v17 = vmul.f32 %v1135_v16, %v897_v9 }
 0x71f   : > { %v913_v19 = vmul.f32 %v999_v3, %v905_v17 }
 0x721   : > { %v921_v20 = vadd.f32 %v1000_v18, %v913_v19 }
 0x723   : > { %922 = vst.msk [vmem:[%s280_s29] sm:$0xff] %vm308_vm1, %v921_v20 }
 0x724 PF: > { %s24_s10 = sadd.s32 1, %s1156_s10  }
 0x725   : > { %p21_p9 = scmp.ge.s32.totalorder %s24_s10, 4  }
 0x727   :  { %23 = sbr.rel (!%p21_p9) target bundleno = 16 (0x10), region = 78 }

// kernel: audio_encoder_forward.7
= control target key start
LH: loop header
LB: loop body
LE: loop exit
PB: predicated region body
PF: predicated region fallthrough
CT: control target
= control target key end

     0   :  { %v290_v0 = vmov 0.0   ;;  %vm291_vm0 = vmmov 0   ;;  %vm61_vm1 = vcmask 261120   ;;  %vm140_vm2 = vcmask 523264   ;;  %s381_s1 = inlined_call_operand.vmem [shape: bf16[32,64], index: 1, kind: input, shape index: {}]   ;;  %s382_s0 = inlined_call_operand.vmem [shape: f32[16,32], index: 0, kind: input, shape index: {}]   ;;  %s383_s3 = inlined_call_operand.vmem [shape: bf16[64,32], index: 3, kind: input, shape index: {}]   ;;  %s384_s2 = inlined_call_operand.vmem [shape: f32[1,64], index: 2, kind: input, shape index: {}]   ;;  %s385_s4 = inlined_call_operand.vmem [shape: f32[1,32], index: 4, kind: input, shape index: {}]   ;;  %s386_s5 = inlined_call_operand.vmem [shape: f32[1,32], index: 5, kind: input, shape index: {}]   ;;  %s387_s6 = inlined_call_operand.vmem [shape: f32[1,32], index: 6, kind: input, shape index: {}]   ;;  %s388_s7 = inlined_call_operand.vmem [shape: f32[16,32], index: 7, kind: output, shape index: {}]  }
   0x1   :  { %258 = vmatprep.subr.bf16.mxu0 %v290_v0  ;;  %v280_v1 = vld [vmem:[%s381_s1] sm:$0xff]   ;;  %262 = vmatprep.mubr.msk.bf16.mxu0 %vm291_vm0, %v290_v0  ;;  %v281_v2 = vld [vmem:[%s381_s1 + $0x8] sm:$0xff]   ;;  %v284_v8 = vld [vmem:[%s383_s3 + $0x10] sm:$0xff]  }
   0x2   :  { %266 = vmatprep.subr.bf16.mxu1 %v290_v0  ;;  %274 = vmatprep.mubr.msk.bf16.mxu1 %vm291_vm0, %v290_v0  ;;  %v27_v3 = vld [vmem:[%s382_s0] sm:$0xff]  ;;  %v28_v4 = vld [vmem:[%s382_s0 + $0x8] sm:$0xff]  ;;  %v285_v9 = vld [vmem:[%s383_s3 + $0x18] sm:$0xff]  }
   0x3   :  { %259 = vmatpush3.bf16.msra.mxu0 %v280_v1  ;;  %v282_v5 = vld [vmem:[%s383_s3] sm:$0xff]   ;;  %v283_v6 = vld [vmem:[%s383_s3 + $0x8] sm:$0xff]   ;;  %v41_v7 = vpack.c.bf16 %v28_v4, %v27_v3 }
   0x4   :  { %260 = vmatprep.subr.bf16.mxu0 %v290_v0  ;;  %267 = vmatpush3.bf16.msra.mxu1 %v282_v5  ;;  %v238_v10 = vld [vmem:[%s384_s2] ss:$0 sm:$0xff] }
   0x5   :  { %268 = vmatprep.subr.bf16.mxu1 %v290_v0  ;;  %v242_v20 = vld [vmem:[%s385_s4] ss:$0 sm:$0xff] }
   0x6   :  { %v248_v48 = vld [vmem:[%s386_s5] ss:$0 sm:$0xff] }
   0x7   :  { %261 = vmatpush3.bf16.msra.mxu0 %v281_v2  ;;  %v249_v50 = vld [vmem:[%s387_s6] ss:$0 sm:$0xff] }
   0x8   :  { %269 = vmatpush3.bf16.msra.mxu1 %v283_v6 }
   0x9   :  { %270 = vmatprep.subr.bf16.mxu1 %v290_v0 }
   0xa   :  { %263 = vmatmul.mubr.msk.bf16.vlgmr.msra.gmra.mrb[0].mxu0 %vm61_vm1, %v41_v7 }
   0xc   :  { %271 = vmatpush3.bf16.msra.mxu1 %v284_v8 }
   0xd   :  { %272 = vmatprep.subr.bf16.mxu1 %v290_v0 }
  0x10   :  { %273 = vmatpush3.bf16.msra.mxu1 %v285_v9 }
  0xdd   :  { %v99_v11 = vpop.f32.mrb[0].mxu0 }
  0xde   :  { %v100_v12 = vadd.f32 %v238_v10, %v99_v11  ;;  %v264_v13 = vpop.f32.mrb[1].mxu0 }
  0xdf   :  { %v102_v14 = vpop.f32.mrb[2].mxu0 }
  0xe0   :  { %v103_v15 = vadd.f32 %v238_v10, %v102_v14  ;;  %v265_v16 = vpop.f32.mrb[3].mxu0  ;;  %v106_v17 = vmax.f32 %v100_v12, 0.0 }
  0xe2   :  { %v107_v18 = vmax.f32 %v103_v15, 0.0 }
  0xe4   :  { %v108_v19 = vpack.c.bf16 %v107_v18, %v106_v17 }
  0xe6   :  { %275 = vmatmul.mubr.msk.bf16.vlgmr.msra.gmra.mrb[0].mxu1 %vm140_vm2, %v108_v19 }
 0x1b9   :  { %v178_v21 = vpop.f32.mrb[0].mxu1 }
 0x1ba   :  { %v179_v22 = vadd.f32 %v242_v20, %v178_v21  ;;  %v276_v23 = vpop.f32.mrb[1].mxu1 }
 0x1bb   :  { %v181_v24 = vpop.f32.mrb[2].mxu1 }
 0x1bc   :  { %v182_v25 = vadd.f32 %v242_v20, %v181_v24  ;;  %v277_v26 = vpop.f32.mrb[3].mxu1  ;;  %v185_v27 = vadd.f32 %v179_v22, %v27_v3 }
 0x1be   :  { %v187_v28 = vsel %vm61_vm1, %v185_v27, 0.0  ;;  %v186_v29 = vadd.f32 %v182_v25, %v28_v4 }
 0x1bf   :  { %188 = vadd.xlane.f32.xlu0 %v187_v28 }
 0x1c0   :  { %v190_v30 = vsel %vm61_vm1, %v186_v29, 0.0 }
 0x1c3   :  { %191 = vadd.xlane.f32.xlu0 %v190_v30 }
 0x24c   :  { %v189_v31 = vpop.xlane.xlu0 %188 }
 0x24d   :  { %v194_v32 = vmul.f32 0.03125, %v189_v31 }
 0x24f   :  { %v196_v33 = vsub.f32 %v185_v27, %v194_v32 }
 0x250   :  { %v192_v34 = vpop.xlane.xlu0 %191 }
 0x251   :  { %v195_v35 = vmul.f32 0.03125, %v192_v34  ;;  %v198_v36 = vmul.f32 %v196_v33, %v196_v33 }
 0x253   :  { %v197_v37 = vsub.f32 %v186_v29, %v195_v35  ;;  %v200_v38 = vsel %vm61_vm1, %v198_v36, 0.0 }
 0x254   :  { %201 = vadd.xlane.f32.xlu1 %v200_v38 }
 0x255   :  { %v199_v39 = vmul.f32 %v197_v37, %v197_v37 }
 0x257   :  { %v203_v40 = vsel %vm61_vm1, %v199_v39, 0.0 }
 0x258   :  { %204 = vadd.xlane.f32.xlu1 %v203_v40 }
 0x2e1   :  { %v202_v41 = vpop.xlane.xlu1 %201 }
 0x2e2   :  { %v206_v42 = vmul.f32 0.03125, %v202_v41 }
 0x2e4   :  { %v208_v43 = vadd.f32 1e-05, %v206_v42 }
 0x2e5   :  { %v205_v44 = vpop.xlane.xlu1 %204 }
 0x2e6   :  { %286 = vrsqrt.f32 %v208_v43  ;;  %v207_v45 = vmul.f32 0.03125, %v205_v44 }
 0x2e8   :  { %v209_v46 = vadd.f32 1e-05, %v207_v45 }
 0x2ea   :  { %288 = vrsqrt.f32 %v209_v46 }
 0x2f0   :  { %v287_v47 = vpop.eup %286 }
 0x2f1   :  { %v212_v49 = vmul.f32 %v287_v47, %v196_v33 }
 0x2f3   :  { %v221_v51 = vmul.f32 %v248_v48, %v212_v49 }
 0x2f4   :  { %v289_v52 = vpop.eup %288 }
 0x2f5   :  { %v230_v53 = vadd.f32 %v249_v50, %v221_v51  ;;  %v213_v54 = vmul.f32 %v289_v52, %v197_v37 }
 0x2f7   :  { %232 = vst.msk [vmem:[%s388_s7] sm:$0xff] %vm61_vm1, %v230_v53  ;;  %v222_v55 = vmul.f32 %v248_v48, %v213_v54 }
 0x2f9   :  { %v231_v56 = vadd.f32 %v249_v50, %v222_v55 }
 0x2fb   :  { %233 = vst.msk [vmem:[%s388_s7 + $0x8] sm:$0xff] %vm61_vm1, %v231_v56 }

// kernel: audio_encoder_forward.9
= control target key start
LH: loop header
LB: loop body
LE: loop exit
PB: predicated region body
PF: predicated region fallthrough
CT: control target
= control target key end

     0   :  { %v330_v1 = vmov 0.0   ;;  %vm331_vm0 = vmmov 0   ;;  %vm62_vm1 = vcmask 261120   ;;  %s430_s0 = inlined_call_operand.vmem [shape: f32[16,32], index: 0, kind: input, shape index: {}]   ;;  %s431_s1 = inlined_call_operand.vmem [shape: bf16[32,64], index: 1, kind: input, shape index: {}]   ;;  %s432_s2 = inlined_call_operand.vmem [shape: f32[1,64], index: 2, kind: input, shape index: {}]   ;;  %s433_s3 = inlined_call_operand.vmem [shape: bf16[64,32], index: 3, kind: input, shape index: {}]   ;;  %s434_s4 = inlined_call_operand.vmem [shape: f32[1,32], index: 4, kind: input, shape index: {}]   ;;  %s435_s5 = inlined_call_operand.vmem [shape: f32[1,32], index: 5, kind: input, shape index: {}]   ;;  %s436_s6 = inlined_call_operand.vmem [shape: f32[1,32], index: 6, kind: input, shape index: {}]   ;;  %s437_s7 = inlined_call_operand.hbm [shape: f32[16,32], index: 7, kind: output, shape index: {}]  }
   0x1   :  { %v296_v0 = vld [vmem:[%s431_s1] sm:$0xff]   ;;  %271 = vmatprep.subr.bf16.mxu0 %v330_v1  ;;  %v297_v2 = vld [vmem:[%s431_s1 + $0x8] sm:$0xff]   ;;  %279 = vmatprep.subr.bf16.mxu1 %v330_v1 }
   0x2   :  { %272 = vmatpush3.bf16.msra.mxu0 %v296_v0  ;;  %275 = vmatprep.mubr.msk.bf16.mxu0 %vm331_vm0, %v330_v1  ;;  %v28_v3 = vld [vmem:[%s430_s0] sm:$0xff]  ;;  %v29_v4 = vld [vmem:[%s430_s0 + $0x8] sm:$0xff] }
   0x3   :  { %273 = vmatprep.subr.bf16.mxu0 %v330_v1  ;;  %v298_v5 = vld [vmem:[%s433_s3] sm:$0xff]   ;;  %287 = vmatprep.mubr.msk.bf16.mxu1 %vm331_vm0, %v330_v1  ;;  %v299_v6 = vld [vmem:[%s433_s3 + $0x8] sm:$0xff]   ;;  %v42_v7 = vpack.c.bf16 %v29_v4, %v28_v3 }
   0x4   :  { %280 = vmatpush3.bf16.msra.mxu1 %v298_v5 }
   0x5   :  { %281 = vmatprep.subr.bf16.mxu1 %v330_v1 }
   0x6   :  { %274 = vmatpush3.bf16.msra.mxu0 %v297_v2 }
   0x7   :  { %12 = vsyncpa [#allocation3], 0  ;;  %v300_v8 = vld [vmem:[%s433_s3 + $0x10] sm:$0xff]   ;;  %v301_v9 = vld [vmem:[%s433_s3 + $0x18] sm:$0xff]   ;;  %vm141_vm2 = vcmask 523264   ;;  %s332_s20 = smov [#allocation2]  }
   0x8   :  { %282 = vmatpush3.bf16.msra.mxu1 %v299_v6  ;;  %v251_v10 = vld [vmem:[%s432_s2] ss:$0 sm:$0xff]  ;;  %s240_s21 = sshll.u32 %s332_s20, 4  ;;  %s241_s21 = int_to_ptr.vmem [resolvable:$true] %s240_s21 }
   0x9   :  { %276 = vmatmul.mubr.msk.bf16.vlgmr.msra.gmra.mrb[0].mxu0 %vm62_vm1, %v42_v7  ;;  %283 = vmatprep.subr.bf16.mxu1 %v330_v1  ;;  %v255_v20 = vld [vmem:[%s434_s4] ss:$0 sm:$0xff]  ;;  %s306_s22 = scalar_lea.vmem %s241_s21, 256  ;;  %p311_p1 = scmp.lt.s32.totalorder %s241_s21, %s241_s21 }
   0xa   :  { %v261_v48 = vld [vmem:[%s435_s5] ss:$0 sm:$0xff]  ;;  %p307_p0 = scmp.ne.s32.totalorder %s241_s21, %s306_s22  ;;  %p312_p2 = scmp.lt.s32.totalorder %s306_s22, %s306_s22 }
   0xb   :  { %v262_v50 = vld [vmem:[%s436_s6] ss:$0 sm:$0xff] }
   0xc   :  { %284 = vmatpush3.bf16.msra.mxu1 %v300_v8  ;;  %p313_p3 = por %p312_p2, %p311_p1 }
   0xd   :  { %285 = vmatprep.subr.bf16.mxu1 %v330_v1 }
   0xe   :  { %p314_p4 = pnand %p313_p3, %p307_p0 }
  0x10   :  { %286 = vmatpush3.bf16.msra.mxu1 %v301_v9 }
  0xdc   :  { %v100_v11 = vpop.f32.mrb[0].mxu0 }
  0xdd   :  { %v101_v12 = vadd.f32 %v251_v10, %v100_v11  ;;  %v277_v13 = vpop.f32.mrb[1].mxu0 }
  0xde   :  { %v103_v14 = vpop.f32.mrb[2].mxu0 }
  0xdf   :  { %v104_v15 = vadd.f32 %v251_v10, %v103_v14  ;;  %v278_v16 = vpop.f32.mrb[3].mxu0  ;;  %v107_v17 = vmax.f32 %v101_v12, 0.0 }
  0xe1   :  { %v108_v18 = vmax.f32 %v104_v15, 0.0 }
  0xe3   :  { %v109_v19 = vpack.c.bf16 %v108_v18, %v107_v17 }
  0xe5   :  { %288 = vmatmul.mubr.msk.bf16.vlgmr.msra.gmra.mrb[0].mxu1 %vm141_vm2, %v109_v19 }
 0x1b8   :  { %v179_v21 = vpop.f32.mrb[0].mxu1 }
 0x1b9   :  { %v180_v22 = vadd.f32 %v255_v20, %v179_v21  ;;  %v289_v23 = vpop.f32.mrb[1].mxu1 }
 0x1ba   :  { %v182_v24 = vpop.f32.mrb[2].mxu1 }
 0x1bb   :  { %v183_v25 = vadd.f32 %v255_v20, %v182_v24  ;;  %v290_v26 = vpop.f32.mrb[3].mxu1  ;;  %v186_v27 = vadd.f32 %v180_v22, %v28_v3 }
 0x1bd   :  { %v188_v28 = vsel %vm62_vm1, %v186_v27, 0.0  ;;  %v187_v29 = vadd.f32 %v183_v25, %v29_v4 }
 0x1be   :  { %189 = vadd.xlane.f32.xlu0 %v188_v28 }
 0x1bf   :  { %v191_v30 = vsel %vm62_vm1, %v187_v29, 0.0 }
 0x1c2   :  { %192 = vadd.xlane.f32.xlu0 %v191_v30 }
 0x24b   :  { %v190_v31 = vpop.xlane.xlu0 %189 }
 0x24c   :  { %v195_v32 = vmul.f32 0.03125, %v190_v31 }
 0x24e   :  { %v197_v33 = vsub.f32 %v186_v27, %v195_v32 }
 0x24f   :  { %v193_v34 = vpop.xlane.xlu0 %192 }
 0x250   :  { %v196_v35 = vmul.f32 0.03125, %v193_v34  ;;  %v199_v36 = vmul.f32 %v197_v33, %v197_v33 }
 0x252   :  { %v198_v37 = vsub.f32 %v187_v29, %v196_v35  ;;  %v201_v38 = vsel %vm62_vm1, %v199_v36, 0.0 }
 0x253   :  { %202 = vadd.xlane.f32.xlu1 %v201_v38 }
 0x254   :  { %v200_v39 = vmul.f32 %v198_v37, %v198_v37 }
 0x256   :  { %v204_v40 = vsel %vm62_vm1, %v200_v39, 0.0 }
 0x257   :  { %205 = vadd.xlane.f32.xlu1 %v204_v40 }
 0x2e0   :  { %v203_v41 = vpop.xlane.xlu1 %202 }
 0x2e1   :  { %v207_v42 = vmul.f32 0.03125, %v203_v41 }
 0x2e3   :  { %v209_v43 = vadd.f32 1e-05, %v207_v42 }
 0x2e4   :  { %v206_v44 = vpop.xlane.xlu1 %205 }
 0x2e5   :  { %302 = vrsqrt.f32 %v209_v43  ;;  %v208_v45 = vmul.f32 0.03125, %v206_v44 }
 0x2e7   :  { %v210_v46 = vadd.f32 1e-05, %v208_v45 }
 0x2e9   :  { %304 = vrsqrt.f32 %v210_v46 }
 0x2ef   :  { %v303_v47 = vpop.eup %302 }
 0x2f0   :  { %v213_v49 = vmul.f32 %v303_v47, %v197_v33 }
 0x2f2   :  { %v222_v51 = vmul.f32 %v261_v48, %v213_v49 }
 0x2f3   :  { %v305_v52 = vpop.eup %304 }
 0x2f4   :  { %v214_v53 = vmul.f32 %v305_v52, %v198_v37  ;;  %v231_v54 = vadd.f32 %v262_v50, %v222_v51 }
 0x2f6   :  { %v223_v55 = vmul.f32 %v261_v48, %v214_v53  ;;  %233 = vst.msk [vmem:[#allocation2] sm:$0xff] %vm62_vm1, %v231_v54 }
 0x2f8   :  { %v232_v56 = vadd.f32 %v262_v50, %v223_v55 }
 0x2fa   :  { %234 = vst.msk [vmem:[#allocation2 + $0x8] sm:$0xff] %vm62_vm1, %v232_v56 }
 0x2fb   :  { %317 = shalt.err (!%p314_p4)
}
 0x2fc   :  { %s318_s23 = scalar_lea.hbm %s437_s7, 256 }
 0x2fd   :  { %p319_p5 = scmp.ne.s32.totalorder %s437_s7, %s318_s23  ;;  %p322_p6 = scmp.lt.u32.totalorder %s318_s23, %s437_s7 }
 0x2ff   :  { %p324_p7 = pnand %p322_p6, %p319_p5 }
 0x301   :  { %327 = shalt.err (!%p324_p7)
}
 0x302   :  { %s333_s28 = smov 128   ;;  %s334_s29 = smov 8  }
 0x303   :  { %246 = dma.vmem_to_hbm [thread:$0]  %s241_s21, 256, %s437_s7, [#allocation3], %s333_s28, %s333_s28, %s334_s29  }
 0x304   :  { %328 = dma.done.wait [#allocation3], 256  }
 0x305   :  { %329 = vsyncadd [#allocation3], 4294967040 }
 0x306   :  { %250 = vsyncpa [#allocation3], 1 }

</bundles_post_ra>
